<compile_context>
chip_gen: v6e
topology: v6e:2x2x1
jax: 0.10.0
libtpu: 0.0.40
codegen_flags: <defaults>
</compile_context>

<pallas_src>
import functools
import numpy as np
import jax
import jax.numpy as jnp
from jax.experimental import pallas as pl
from jax.experimental.pallas import tpu as pltpu

BN_EPS = 1e-5


# --------------------------------------------------------------------- kernel
def haarconvb_kernel(x_ref, halo_ref, wmask_ref, scale_ref, shift_ref,
                     yrow_ref, wc_ref, b_ref, o_ref, *, T, Wo):
    bf16 = jnp.bfloat16

    scale = scale_ref[...]                      # (1, C) folded BatchNorm scale
    shift = shift_ref[...]                      # (1, C) folded BatchNorm shift

    # parity sub-images of this row-tile (bf16 from HBM -> f32 elementwise)
    xp = x_ref[0].astype(jnp.float32)           # (4, T, C)
    A  = xp[0] * scale + shift                  # even row, even col
    Bq = xp[1] * scale + shift                  # even row, odd  col
    Cq = xp[2] * scale + shift                  # odd  row, even col
    Dq = xp[3] * scale + shift                  # odd  row, odd  col

    # Haar: x2 == 2x2 block-average broadcast, x1 == bn(x) - x2
    avg = 0.25 * (A + Bq + Cq + Dq)             # (T, C)
    a1 = A - avg
    b1 = Bq - avg
    c1 = Cq - avg
    d1 = Dq - avg

    # previous-block-row halo (already BN'd + Haar-split in the wrapper; zeros
    # for the first tile, which is exactly the conv's top zero padding)
    halo = halo_ref[...]                        # (1, 1, 3, Wo, C)
    c1_p = halo[0, 0, 0]
    d1_p = halo[0, 0, 1]
    a2_p = halo[0, 0, 2]

    wmask = wmask_ref[...]                      # (T, 1): 0.0 where wo == 0

    def sh_w(v):   # (ho, wo) <- (ho, wo-1); left zero-padding via wmask
        # static-shift roll: wrapped row lands on a wo==0 row and is masked out
        return jnp.roll(v, 1, axis=0) * wmask

    def sh_h(v, prev):   # (ho, wo) <- (ho-1, wo); first block-row from the halo
        if T == Wo:
            return prev
        return jnp.concatenate([prev, v[:T - Wo, :]], axis=0)

    c1h = sh_h(c1, c1_p)
    d1h = sh_h(d1, d1_p)
    a2h = sh_h(avg, a2_p)

    # 9 x1 taps + 4 deduplicated x2 slabs -> ONE K = 13*C MXU matmul.
    # The SE channel gate is folded into the weight rows (yrow), not the data.
    taps = (
        sh_w(d1h),   # (0,0) x1
        c1h,         # (0,1) x1
        d1h,         # (0,2) x1
        sh_w(b1),    # (1,0) x1
        a1,          # (1,1) x1
        b1,          # (1,2) x1
        sh_w(d1),    # (2,0) x1
        c1,          # (2,1) x1
        d1,          # (2,2) x1
        avg,         # x2 shared by taps (1,1),(1,2),(2,1),(2,2)
        sh_w(avg),   # x2 shared by taps (1,0),(2,0)
        a2h,         # x2 shared by taps (0,1),(0,2)
        sh_w(a2h),   # x2 for tap (0,0)
    )
    tap = jnp.concatenate([t.astype(bf16) for t in taps], axis=-1)  # (T, 13C)

    # per-batch SE gate applied to the weight rows in f32, then bf16 for MXU
    wc = (wc_ref[...] * yrow_ref[0]).astype(bf16)                   # (13C, C)

    acc = jnp.dot(tap, wc, preferred_element_type=jnp.float32)      # MXU
    o_ref[0] = jnp.maximum(acc + b_ref[...], 0.0)                   # bias + ReLU


# -------------------------------------------------------------------- wrapper
def _pick_tile_rows(Ho, Wo, C, tile_rows):
    """Rows-of-output (Ho) per tile; tiles align to full output rows."""
    if tile_rows is not None:
        th = int(tile_rows)
        assert Ho % th == 0, "tile_rows must divide Ho"
        assert (th * Wo) % 8 == 0 or th == Ho, "tile must be 8-row aligned"
        return th
    # keep the per-step slab footprint small (well under scoped-VMEM defaults)
    budget = max(Wo, min(2048, (1 << 16) // max(C, 1)))
    best = None
    for th in range(1, Ho + 1):
        if Ho % th:
            continue
        rows = th * Wo
        if rows <= budget and (rows % 8 == 0 or th == Ho):
            best = th
    return best if best is not None else Ho


@functools.partial(jax.jit, static_argnames=("tile_rows",))
def haarconvb_forward(x_nchw, params, tile_rows=None):
    B, C, H, W = x_nchw.shape
    # The algebraic reduction assumes even H/W, J=1, wave='haar',
    # mode='symmetric' (as in the PyTorch module).
    assert H % 2 == 0 and W % 2 == 0
    Ho, Wo = H // 2, W // 2
    HoWo = Ho * Wo
    C2 = 2 * C

    # ---- training-mode BatchNorm batch statistics (tiny per-channel reduce)
    mu_bc = jnp.mean(x_nchw, axis=(2, 3))                         # (B, C)
    mean = jnp.mean(mu_bc, axis=0)                                # (C,)
    var = jnp.mean((x_nchw - mean[None, :, None, None]) ** 2, axis=(0, 2, 3))
    bn_scale = params["bn_gamma"] / jnp.sqrt(var + BN_EPS)        # (C,)
    bn_shift = params["bn_beta"] - mean * bn_scale                # (C,)

    # ---- SE gate hoisted out of the kernel:
    #   gap over the x1 half is exactly 0; gap over x2 == per-image mean(bn(x))
    gap2 = mu_bc * bn_scale[None, :] + bn_shift[None, :]          # (B, C)
    h = jax.nn.relu(jnp.dot(gap2, params["se_w1"][C:, :],
                            precision=jax.lax.Precision.HIGHEST))
    y = jax.nn.sigmoid(jnp.dot(h, params["se_w2"],
                               precision=jax.lax.Precision.HIGHEST))   # (B, 2C)
    y1, y2 = y[:, :C], y[:, C:]
    # per-contraction-row SE scale: 9 x1 tap groups then 4 x2 groups
    y_rows = jnp.concatenate([jnp.tile(y1, (1, 9)), jnp.tile(y2, (1, 4))],
                             axis=1)[..., None]                   # (B, 13C, 1)

    # ---- layout glue: NCHW -> parity-decomposed channels-last (B,4,Ho*Wo,C)
    x_par = (x_nchw.transpose(0, 2, 3, 1)                         # NHWC
             .reshape(B, Ho, 2, Wo, 2, C)
             .transpose(0, 2, 4, 1, 3, 5)                         # (B,hp,wp,ho,wo,C)
             .reshape(B, 4, HoWo, C))

    # ---- tiling over output rows + one-block-row halo per tile
    TH = _pick_tile_rows(Ho, Wo, C, tile_rows)
    T = TH * Wo
    n_tiles = Ho // TH

    if n_tiles > 1:
        x_rows = x_par.reshape(B, 4, Ho, Wo, C)
        prev = x_rows[:, :, TH - 1::TH, :, :][:, :, :n_tiles - 1]  # (B,4,nt-1,Wo,C)
        prev = (prev * bn_scale[None, None, None, None, :]
                + bn_shift[None, None, None, None, :])
        avg_p = 0.25 * jnp.sum(prev, axis=1)                       # (B,nt-1,Wo,C)
        halo = jnp.stack([prev[:, 2] - avg_p, prev[:, 3] - avg_p, avg_p], axis=2)
        halo = jnp.concatenate(
            [jnp.zeros((B, 1, 3, Wo, C), jnp.float32), halo], axis=1)
    else:
        halo = jnp.zeros((B, 1, 3, Wo, C), jnp.float32)

    # ---- conv weight OIHW -> deduplicated (13C, C): 9 x1 tap blocks, then the
    # 4 unique x2 slabs with their duplicate tap-weights pre-summed.
    w = jnp.transpose(params["conv_w"], (2, 3, 1, 0)).reshape(9, C2, C)
    w_x1 = w[:, :C, :].reshape(9 * C, C)
    w_x2 = w[:, C:, :]
    wc = jnp.concatenate(
        [w_x1,
         w_x2[4] + w_x2[5] + w_x2[7] + w_x2[8],   # avg
         w_x2[3] + w_x2[6],                       # avg shifted in w
         w_x2[1] + w_x2[2],                       # avg shifted in h
         w_x2[0]],                                # avg shifted in h and w
        axis=0).astype(jnp.float32)               # (13C, C)

    # mask that zeroes rows with wo == 0 (left zero padding of the conv)
    wmask = (jnp.arange(T) % Wo != 0).astype(jnp.float32).reshape(T, 1)

    kernel = functools.partial(haarconvb_kernel, T=T, Wo=Wo)
    out_flat = pl.pallas_call(
        kernel,
        out_shape=jax.ShapeDtypeStruct((B, HoWo, C), jnp.float32),
        grid=(B, n_tiles),
        in_specs=[
            pl.BlockSpec((1, 4, T, C), lambda b, t: (b, 0, t, 0)),        # x tile (bf16)
            pl.BlockSpec((1, 1, 3, Wo, C), lambda b, t: (b, t, 0, 0, 0)), # halo row
            pl.BlockSpec((T, 1), lambda b, t: (0, 0)),                    # wo==0 mask
            pl.BlockSpec((1, C), lambda b, t: (0, 0)),                    # bn scale
            pl.BlockSpec((1, C), lambda b, t: (0, 0)),                    # bn shift
            pl.BlockSpec((1, 13 * C, 1), lambda b, t: (b, 0, 0)),         # SE row gate
            pl.BlockSpec((13 * C, C), lambda b, t: (0, 0)),               # conv weight
            pl.BlockSpec((1, C), lambda b, t: (0, 0)),                    # conv bias
        ],
        out_specs=pl.BlockSpec((1, T, C), lambda b, t: (b, t, 0)),
        compiler_params=pltpu.CompilerParams(
            dimension_semantics=("parallel", "parallel"),
            vmem_limit_bytes=32 * 1024 * 1024),
    )(x_par.astype(jnp.bfloat16), halo, wmask,
      bn_scale.reshape(1, C), bn_shift.reshape(1, C),
      y_rows, wc, params["conv_b"].reshape(1, C))

    # glue: back to NCHW
    return out_flat.reshape(B, Ho, Wo, C).transpose(0, 3, 1, 2)


# ---------------------------------------------------------------- params/ref
def init_params(key, inc):
    c2 = 2 * inc
    hidden = max(c2 // 16, 1)   # SE reduction_ratio=16
    ks = jax.random.split(key, 6)
    return dict(
        bn_gamma=1.0 + 0.1 * jax.random.normal(ks[0], (inc,), jnp.float32),
        bn_beta=0.1 * jax.random.normal(ks[1], (inc,), jnp.float32),
        se_w1=0.5 * jax.random.normal(ks[2], (c2, hidden), jnp.float32),
        se_w2=0.5 * jax.random.normal(ks[3], (hidden, c2), jnp.float32),
        conv_w=0.1 * jax.random.normal(ks[4], (inc, c2, 3, 3), jnp.float32),  # OIHW
        conv_b=0.1 * jax.random.normal(ks[5], (inc,), jnp.float32),
    )


def reference_forward(x_nchw, params):
    """Pure-JAX reference with the same semantics as the PyTorch module."""
    B, C, H, W = x_nchw.shape
    mean = jnp.mean(x_nchw, axis=(0, 2, 3), keepdims=True)
    var = jnp.mean((x_nchw - mean) ** 2, axis=(0, 2, 3), keepdims=True)
    xb = (params["bn_gamma"][None, :, None, None] * (x_nchw - mean)
          / jnp.sqrt(var + BN_EPS) + params["bn_beta"][None, :, None, None])
    xr = xb.reshape(B, C, H // 2, 2, W // 2, 2)
    avg = jnp.mean(xr, axis=(3, 5), keepdims=True)
    x2 = jnp.broadcast_to(avg, xr.shape).reshape(B, C, H, W)   # yfm((LL, 0))
    x1 = xb - x2                                               # yfm((0, HH))
    xcat = jnp.concatenate([x1, x2], axis=1)
    gap = jnp.mean(xcat, axis=(2, 3))
    h = jax.nn.relu(jnp.dot(gap, params["se_w1"], precision=jax.lax.Precision.HIGHEST))
    y = jax.nn.sigmoid(jnp.dot(h, params["se_w2"], precision=jax.lax.Precision.HIGHEST))
    xse = xcat * y[:, :, None, None]
    out = jax.lax.conv_general_dilated(
        xse, params["conv_w"], window_strides=(2, 2), padding=((1, 1), (1, 1)),
        dimension_numbers=("NCHW", "OIHW", "NCHW"),
        precision=jax.lax.Precision.HIGHEST)
    return jax.nn.relu(out + params["conv_b"][None, :, None, None])


if __name__ == "__main__":
    key = jax.random.PRNGKey(0)
    kx, kp, kx2 = jax.random.split(key, 3)

    # case 1: small image (single row-tile path)
    B, inc, H, W = 2, 16, 16, 16
    x = jax.random.normal(kx, (B, inc, H, W), jnp.float32)   # NCHW, like PyTorch
    params = init_params(kp, inc)
    out = jax.block_until_ready(haarconvb_forward(x, params))
    ref = jax.block_until_ready(reference_forward(x, params))
    assert out.shape == (B, inc, H // 2, W // 2)
    np.testing.assert_allclose(np.asarray(out), np.asarray(ref), rtol=2e-2, atol=2e-2)

    # case 2: larger image with a forced small row-tile (exercises the halo /
    # multi-tile pipeline that keeps VMEM bounded at production sizes)
    H2 = W2 = 32
    x2 = jax.random.normal(kx2, (B, inc, H2, W2), jnp.float32)
    out2 = jax.block_until_ready(haarconvb_forward(x2, params, tile_rows=4))
    ref2 = jax.block_until_ready(reference_forward(x2, params))
    assert out2.shape == (B, inc, H2 // 2, W2 // 2)
    np.testing.assert_allclose(np.asarray(out2), np.asarray(ref2), rtol=2e-2, atol=2e-2)

    print("KERNEL_OK")
</pallas_src>

<mosaic_0001>
module attributes {stable_mosaic.version = 11 : i64} {
  func.func @haarconvb_kernel(%arg0: i32, %arg1: i32, %arg2: memref<1x4x64x16xbf16, #tpu.memory_space<vmem>>, %arg3: memref<1x1x3x8x16xf32, #tpu.memory_space<vmem>>, %arg4: memref<64x1xf32, #tpu.memory_space<vmem>>, %arg5: memref<1x16xf32, #tpu.memory_space<vmem>>, %arg6: memref<1x16xf32, #tpu.memory_space<vmem>>, %arg7: memref<1x208x1xf32, #tpu.memory_space<vmem>>, %arg8: memref<208x16xf32, #tpu.memory_space<vmem>>, %arg9: memref<1x16xf32, #tpu.memory_space<vmem>>, %arg10: memref<1x64x16xf32, #tpu.memory_space<vmem>>) attributes {dimension_semantics = [#tpu.dimension_semantics<parallel>, #tpu.dimension_semantics<parallel>], iteration_bounds = array<i64: 2, 1>, scalar_prefetch = 0 : i64, scratch_operands = 0 : i64, tpu.core_type = #tpu.core_type<tc>, window_params = [{transform_indices = @transform_0, window_bounds = array<i64: 1, 4, 64, 16>}, {transform_indices = @transform_1, window_bounds = array<i64: 1, 1, 3, 8, 16>}, {pipeline_mode = #tpu.pipeline_mode<synchronous>, transform_indices = @transform_2, window_bounds = array<i64: 64, 1>}, {pipeline_mode = #tpu.pipeline_mode<synchronous>, transform_indices = @transform_3, window_bounds = array<i64: 1, 16>}, {pipeline_mode = #tpu.pipeline_mode<synchronous>, transform_indices = @transform_4, window_bounds = array<i64: 1, 16>}, {transform_indices = @transform_5, window_bounds = array<i64: 1, 208, 1>}, {pipeline_mode = #tpu.pipeline_mode<synchronous>, transform_indices = @transform_6, window_bounds = array<i64: 208, 16>}, {pipeline_mode = #tpu.pipeline_mode<synchronous>, transform_indices = @transform_7, window_bounds = array<i64: 1, 16>}, {transform_indices = @transform_8, window_bounds = array<i64: 1, 64, 16>}]} {
    %c0 = arith.constant 0 : index
    %c0_0 = arith.constant 0 : index
    %0 = vector.load %arg5[%c0, %c0_0] : memref<1x16xf32, #tpu.memory_space<vmem>>, vector<1x16xf32>
    %c0_1 = arith.constant 0 : index
    %c0_2 = arith.constant 0 : index
    %1 = vector.load %arg6[%c0_1, %c0_2] : memref<1x16xf32, #tpu.memory_space<vmem>>, vector<1x16xf32>
    %c0_3 = arith.constant 0 : index
    %c0_4 = arith.constant 0 : index
    %c0_5 = arith.constant 0 : index
    %c0_6 = arith.constant 0 : index
    %2 = vector.load %arg2[%c0_3, %c0_4, %c0_5, %c0_6] : memref<1x4x64x16xbf16, #tpu.memory_space<vmem>>, vector<1x4x64x16xbf16>
    %3 = vector.shape_cast %2 : vector<1x4x64x16xbf16> to vector<4x64x16xbf16>
    %4 = arith.extf %3 : vector<4x64x16xbf16> to vector<4x64x16xf32>
    %5 = vector.extract_strided_slice %4 {offsets = [0, 0, 0], sizes = [1, 64, 16], strides = [1, 1, 1]} : vector<4x64x16xf32> to vector<1x64x16xf32>
    %6 = vector.shape_cast %5 : vector<1x64x16xf32> to vector<64x16xf32>
    %7 = vector.broadcast %0 : vector<1x16xf32> to vector<64x16xf32>
    %8 = arith.mulf %6, %7 : vector<64x16xf32>
    %9 = vector.broadcast %1 : vector<1x16xf32> to vector<64x16xf32>
    %10 = arith.addf %8, %9 : vector<64x16xf32>
    %11 = vector.extract_strided_slice %4 {offsets = [1, 0, 0], sizes = [1, 64, 16], strides = [1, 1, 1]} : vector<4x64x16xf32> to vector<1x64x16xf32>
    %12 = vector.shape_cast %11 : vector<1x64x16xf32> to vector<64x16xf32>
    %13 = vector.broadcast %0 : vector<1x16xf32> to vector<64x16xf32>
    %14 = arith.mulf %12, %13 : vector<64x16xf32>
    %15 = vector.broadcast %1 : vector<1x16xf32> to vector<64x16xf32>
    %16 = arith.addf %14, %15 : vector<64x16xf32>
    %17 = vector.extract_strided_slice %4 {offsets = [2, 0, 0], sizes = [1, 64, 16], strides = [1, 1, 1]} : vector<4x64x16xf32> to vector<1x64x16xf32>
    %18 = vector.shape_cast %17 : vector<1x64x16xf32> to vector<64x16xf32>
    %19 = vector.broadcast %0 : vector<1x16xf32> to vector<64x16xf32>
    %20 = arith.mulf %18, %19 : vector<64x16xf32>
    %21 = vector.broadcast %1 : vector<1x16xf32> to vector<64x16xf32>
    %22 = arith.addf %20, %21 : vector<64x16xf32>
    %23 = vector.extract_strided_slice %4 {offsets = [3, 0, 0], sizes = [1, 64, 16], strides = [1, 1, 1]} : vector<4x64x16xf32> to vector<1x64x16xf32>
    %24 = vector.shape_cast %23 : vector<1x64x16xf32> to vector<64x16xf32>
    %25 = vector.broadcast %0 : vector<1x16xf32> to vector<64x16xf32>
    %26 = arith.mulf %24, %25 : vector<64x16xf32>
    %27 = vector.broadcast %1 : vector<1x16xf32> to vector<64x16xf32>
    %28 = arith.addf %26, %27 : vector<64x16xf32>
    %29 = arith.addf %10, %16 : vector<64x16xf32>
    %30 = arith.addf %29, %22 : vector<64x16xf32>
    %31 = arith.addf %30, %28 : vector<64x16xf32>
    %cst = arith.constant 2.500000e-01 : f32
    %32 = vector.broadcast %cst : f32 to vector<64x16xf32>
    %33 = arith.mulf %32, %31 : vector<64x16xf32>
    %34 = arith.subf %10, %33 : vector<64x16xf32>
    %35 = arith.subf %16, %33 : vector<64x16xf32>
    %36 = arith.subf %22, %33 : vector<64x16xf32>
    %37 = arith.subf %28, %33 : vector<64x16xf32>
    %c0_7 = arith.constant 0 : index
    %c0_8 = arith.constant 0 : index
    %c0_9 = arith.constant 0 : index
    %c0_10 = arith.constant 0 : index
    %c0_11 = arith.constant 0 : index
    %38 = vector.load %arg3[%c0_7, %c0_8, %c0_9, %c0_10, %c0_11] : memref<1x1x3x8x16xf32, #tpu.memory_space<vmem>>, vector<1x1x3x8x16xf32>
    %39 = vector.extract_strided_slice %38 {offsets = [0, 0, 0, 0, 0], sizes = [1, 1, 1, 8, 16], strides = [1, 1, 1, 1, 1]} : vector<1x1x3x8x16xf32> to vector<1x1x1x8x16xf32>
    %40 = vector.shape_cast %39 : vector<1x1x1x8x16xf32> to vector<8x16xf32>
    %41 = vector.extract_strided_slice %38 {offsets = [0, 0, 1, 0, 0], sizes = [1, 1, 1, 8, 16], strides = [1, 1, 1, 1, 1]} : vector<1x1x3x8x16xf32> to vector<1x1x1x8x16xf32>
    %42 = vector.shape_cast %41 : vector<1x1x1x8x16xf32> to vector<8x16xf32>
    %43 = vector.extract_strided_slice %38 {offsets = [0, 0, 2, 0, 0], sizes = [1, 1, 1, 8, 16], strides = [1, 1, 1, 1, 1]} : vector<1x1x3x8x16xf32> to vector<1x1x1x8x16xf32>
    %44 = vector.shape_cast %43 : vector<1x1x1x8x16xf32> to vector<8x16xf32>
    %c0_12 = arith.constant 0 : index
    %c0_13 = arith.constant 0 : index
    %45 = vector.load %arg4[%c0_12, %c0_13] : memref<64x1xf32, #tpu.memory_space<vmem>>, vector<64x1xf32>
    %46 = vector.extract_strided_slice %36 {offsets = [0, 0], sizes = [56, 16], strides = [1, 1]} : vector<64x16xf32> to vector<56x16xf32>
    %47 = tpu.concatenate %40, %46 in 0 : vector<8x16xf32>, vector<56x16xf32> -> vector<64x16xf32>
    %48 = vector.extract_strided_slice %37 {offsets = [0, 0], sizes = [56, 16], strides = [1, 1]} : vector<64x16xf32> to vector<56x16xf32>
    %49 = tpu.concatenate %42, %48 in 0 : vector<8x16xf32>, vector<56x16xf32> -> vector<64x16xf32>
    %50 = vector.extract_strided_slice %33 {offsets = [0, 0], sizes = [56, 16], strides = [1, 1]} : vector<64x16xf32> to vector<56x16xf32>
    %51 = tpu.concatenate %44, %50 in 0 : vector<8x16xf32>, vector<56x16xf32> -> vector<64x16xf32>
    %52 = vector.extract_strided_slice %49 {offsets = [63, 0], sizes = [1, 16], strides = [1, 1]} : vector<64x16xf32> to vector<1x16xf32>
    %53 = vector.extract_strided_slice %49 {offsets = [0, 0], sizes = [63, 16], strides = [1, 1]} : vector<64x16xf32> to vector<63x16xf32>
    %54 = tpu.concatenate %52, %53 in 0 : vector<1x16xf32>, vector<63x16xf32> -> vector<64x16xf32>
    %55 = vector.broadcast %45 : vector<64x1xf32> to vector<64x16xf32>
    %56 = arith.mulf %54, %55 : vector<64x16xf32>
    %57 = vector.extract_strided_slice %35 {offsets = [63, 0], sizes = [1, 16], strides = [1, 1]} : vector<64x16xf32> to vector<1x16xf32>
    %58 = vector.extract_strided_slice %35 {offsets = [0, 0], sizes = [63, 16], strides = [1, 1]} : vector<64x16xf32> to vector<63x16xf32>
    %59 = tpu.concatenate %57, %58 in 0 : vector<1x16xf32>, vector<63x16xf32> -> vector<64x16xf32>
    %60 = vector.broadcast %45 : vector<64x1xf32> to vector<64x16xf32>
    %61 = arith.mulf %59, %60 : vector<64x16xf32>
    %62 = vector.extract_strided_slice %37 {offsets = [63, 0], sizes = [1, 16], strides = [1, 1]} : vector<64x16xf32> to vector<1x16xf32>
    %63 = vector.extract_strided_slice %37 {offsets = [0, 0], sizes = [63, 16], strides = [1, 1]} : vector<64x16xf32> to vector<63x16xf32>
    %64 = tpu.concatenate %62, %63 in 0 : vector<1x16xf32>, vector<63x16xf32> -> vector<64x16xf32>
    %65 = vector.broadcast %45 : vector<64x1xf32> to vector<64x16xf32>
    %66 = arith.mulf %64, %65 : vector<64x16xf32>
    %67 = vector.extract_strided_slice %33 {offsets = [63, 0], sizes = [1, 16], strides = [1, 1]} : vector<64x16xf32> to vector<1x16xf32>
    %68 = vector.extract_strided_slice %33 {offsets = [0, 0], sizes = [63, 16], strides = [1, 1]} : vector<64x16xf32> to vector<63x16xf32>
    %69 = tpu.concatenate %67, %68 in 0 : vector<1x16xf32>, vector<63x16xf32> -> vector<64x16xf32>
    %70 = vector.broadcast %45 : vector<64x1xf32> to vector<64x16xf32>
    %71 = arith.mulf %69, %70 : vector<64x16xf32>
    %72 = vector.extract_strided_slice %51 {offsets = [63, 0], sizes = [1, 16], strides = [1, 1]} : vector<64x16xf32> to vector<1x16xf32>
    %73 = vector.extract_strided_slice %51 {offsets = [0, 0], sizes = [63, 16], strides = [1, 1]} : vector<64x16xf32> to vector<63x16xf32>
    %74 = tpu.concatenate %72, %73 in 0 : vector<1x16xf32>, vector<63x16xf32> -> vector<64x16xf32>
    %75 = vector.broadcast %45 : vector<64x1xf32> to vector<64x16xf32>
    %76 = arith.mulf %74, %75 : vector<64x16xf32>
    %77 = arith.truncf %56 : vector<64x16xf32> to vector<64x16xbf16>
    %78 = arith.truncf %47 : vector<64x16xf32> to vector<64x16xbf16>
    %79 = arith.truncf %49 : vector<64x16xf32> to vector<64x16xbf16>
    %80 = arith.truncf %61 : vector<64x16xf32> to vector<64x16xbf16>
    %81 = arith.truncf %34 : vector<64x16xf32> to vector<64x16xbf16>
    %82 = arith.truncf %35 : vector<64x16xf32> to vector<64x16xbf16>
    %83 = arith.truncf %66 : vector<64x16xf32> to vector<64x16xbf16>
    %84 = arith.truncf %36 : vector<64x16xf32> to vector<64x16xbf16>
    %85 = arith.truncf %37 : vector<64x16xf32> to vector<64x16xbf16>
    %86 = arith.truncf %33 : vector<64x16xf32> to vector<64x16xbf16>
    %87 = arith.truncf %71 : vector<64x16xf32> to vector<64x16xbf16>
    %88 = arith.truncf %51 : vector<64x16xf32> to vector<64x16xbf16>
    %89 = arith.truncf %76 : vector<64x16xf32> to vector<64x16xbf16>
    %90 = tpu.concatenate %77, %78, %79, %80, %81, %82, %83, %84, %85, %86, %87, %88, %89 in 1 : vector<64x16xbf16>, vector<64x16xbf16>, vector<64x16xbf16>, vector<64x16xbf16>, vector<64x16xbf16>, vector<64x16xbf16>, vector<64x16xbf16>, vector<64x16xbf16>, vector<64x16xbf16>, vector<64x16xbf16>, vector<64x16xbf16>, vector<64x16xbf16>, vector<64x16xbf16> -> vector<64x208xbf16>
    %c0_14 = arith.constant 0 : index
    %c0_15 = arith.constant 0 : index
    %91 = vector.load %arg8[%c0_14, %c0_15] : memref<208x16xf32, #tpu.memory_space<vmem>>, vector<208x16xf32>
    %c0_16 = arith.constant 0 : index
    %c0_17 = arith.constant 0 : index
    %c0_18 = arith.constant 0 : index
    %92 = vector.load %arg7[%c0_16, %c0_17, %c0_18] : memref<1x208x1xf32, #tpu.memory_space<vmem>>, vector<1x208x1xf32>
    %93 = vector.shape_cast %92 : vector<1x208x1xf32> to vector<208x1xf32>
    %94 = vector.broadcast %93 : vector<208x1xf32> to vector<208x16xf32>
    %95 = arith.mulf %91, %94 : vector<208x16xf32>
    %96 = arith.truncf %95 : vector<208x16xf32> to vector<208x16xbf16>
    %cst_19 = arith.constant dense<0.000000e+00> : vector<64x16xf32>
    %97 = tpu.matmul %90, %96, %cst_19 {dimension_numbers = #tpu.dot_dimension_numbers<[1], [0], [0], [1], [0, 0, 1, 1], [], []>} : vector<64x208xbf16>, vector<208x16xbf16>, vector<64x16xf32> -> vector<64x16xf32>
    %c0_20 = arith.constant 0 : index
    %c0_21 = arith.constant 0 : index
    %98 = vector.load %arg9[%c0_20, %c0_21] : memref<1x16xf32, #tpu.memory_space<vmem>>, vector<1x16xf32>
    %99 = vector.broadcast %98 : vector<1x16xf32> to vector<64x16xf32>
    %100 = arith.addf %97, %99 : vector<64x16xf32>
    %cst_22 = arith.constant 0.000000e+00 : f32
    %101 = vector.broadcast %cst_22 : f32 to vector<64x16xf32>
    %102 = arith.maximumf %100, %101 : vector<64x16xf32>
    %c0_23 = arith.constant 0 : index
    %c0_24 = arith.constant 0 : index
    %c0_25 = arith.constant 0 : index
    %103 = vector.load %arg10[%c0_23, %c0_24, %c0_25] : memref<1x64x16xf32, #tpu.memory_space<vmem>>, vector<1x64x16xf32>
    %104 = vector.shape_cast %103 : vector<1x64x16xf32> to vector<64x16xf32>
    %105 = vector.shape_cast %102 : vector<64x16xf32> to vector<1x64x16xf32>
    tpu.vector_store %arg10[%c0_23, %c0_24, %c0_25], %105 {strides = array<i32>} : memref<1x64x16xf32, #tpu.memory_space<vmem>>, vector<1x64x16xf32>,
    return
  }
  func.func @transform_0(%arg0: i32, %arg1: i32) -> (i32, i32, i32, i32) {
    %c0_i32 = arith.constant 0 : i32
    %c0_i32_0 = arith.constant 0 : i32
    %c0_i32_1 = arith.constant 0 : i32
    return %arg0, %c0_i32, %arg1, %c0_i32_0 : i32, i32, i32, i32
  }
  func.func @transform_1(%arg0: i32, %arg1: i32) -> (i32, i32, i32, i32, i32) {
    %c0_i32 = arith.constant 0 : i32
    %c0_i32_0 = arith.constant 0 : i32
    %c0_i32_1 = arith.constant 0 : i32
    %c0_i32_2 = arith.constant 0 : i32
    return %arg0, %arg1, %c0_i32, %c0_i32_0, %c0_i32_1 : i32, i32, i32, i32, i32
  }
  func.func @transform_2(%arg0: i32, %arg1: i32) -> (i32, i32) {
    %c0_i32 = arith.constant 0 : i32
    %c0_i32_0 = arith.constant 0 : i32
    %c0_i32_1 = arith.constant 0 : i32
    return %c0_i32, %c0_i32_0 : i32, i32
  }
  func.func @transform_3(%arg0: i32, %arg1: i32) -> (i32, i32) {
    %c0_i32 = arith.constant 0 : i32
    %c0_i32_0 = arith.constant 0 : i32
    %c0_i32_1 = arith.constant 0 : i32
    return %c0_i32, %c0_i32_0 : i32, i32
  }
  func.func @transform_4(%arg0: i32, %arg1: i32) -> (i32, i32) {
    %c0_i32 = arith.constant 0 : i32
    %c0_i32_0 = arith.constant 0 : i32
    %c0_i32_1 = arith.constant 0 : i32
    return %c0_i32, %c0_i32_0 : i32, i32
  }
  func.func @transform_5(%arg0: i32, %arg1: i32) -> (i32, i32, i32) {
    %c0_i32 = arith.constant 0 : i32
    %c0_i32_0 = arith.constant 0 : i32
    %c0_i32_1 = arith.constant 0 : i32
    return %arg0, %c0_i32, %c0_i32_0 : i32, i32, i32
  }
  func.func @transform_6(%arg0: i32, %arg1: i32) -> (i32, i32) {
    %c0_i32 = arith.constant 0 : i32
    %c0_i32_0 = arith.constant 0 : i32
    %c0_i32_1 = arith.constant 0 : i32
    return %c0_i32, %c0_i32_0 : i32, i32
  }
  func.func @transform_7(%arg0: i32, %arg1: i32) -> (i32, i32) {
    %c0_i32 = arith.constant 0 : i32
    %c0_i32_0 = arith.constant 0 : i32
    %c0_i32_1 = arith.constant 0 : i32
    return %c0_i32, %c0_i32_0 : i32, i32
  }
  func.func @transform_8(%arg0: i32, %arg1: i32) -> (i32, i32, i32) {
    %c0_i32 = arith.constant 0 : i32
    %c0_i32_0 = arith.constant 0 : i32
    return %arg0, %arg1, %c0_i32 : i32, i32, i32
  }
}

</mosaic_0001>

<bundles_post_ra>
// kernel: tile.19
= control target key start
LH: loop header
LB: loop body
LE: loop exit
PB: predicated region body
PF: predicated region fallthrough
CT: control target
= control target key end

     0   :  { %s30_s10 = smov 3  ;;  %s11_s11 = smov 3  ;;  %vm13_vm0 = vcmask 130048   ;;  %vm20_vm1 = vcmask 523648   ;;  %vm27_vm2 = vcmask 392448   ;;  %vm34_vm3 = vcmask 261248   ;;  %s70_s0 = inlined_call_operand.vmem [shape: f32[2,4,16], index: 0, kind: input, shape index: {}]   ;;  %s71_s1 = inlined_call_operand.vmem [shape: f32[2,64], index: 1, kind: output, shape index: {}]  }
   0x1   :  { %v44_v0 = vld [vmem:[%s70_s0 + $0x4] sm:$0xf]  ;;  %v9_v1 = vld [vmem:[%s70_s0] sm:$0xf]  ;;  %s16_s0 = smov 3  ;;  %s23_s12 = smov 3 }
   0x2   :  { %8 = vst [vmem:[#allocation1 + $0x8] sm:$0xf] %v44_v0  ;;  %10 = vst [vmem:[#allocation1] sm:$0xf] %v9_v1  ;;  %s48_s13 = smov 48   ;;  %s49_s14 = smov 16  }
   0x3   :  { %s50_s15 = smov 32  }
   0x9   :  { %v17_v2 = vld [vmem:[#allocation1 + $0x3] ss:$8 sm:%s16_s0]   ;;  %v31_v3 = vld [vmem:[#allocation1 + $0x1] ss:$8 sm:%s30_s10]   ;;  %v12_v4 = vld [vmem:[#allocation1] ss:$8 sm:%s11_s11]  }
   0xa   :  { %18 = vrot.lane.b32.xlu0 %v17_v2, %s48_s13  ;;  %32 = vrot.lane.b32.xlu1 %v31_v3, %s49_s14  ;;  %v24_v5 = vld [vmem:[#allocation1 + $0x2] ss:$8 sm:%s23_s12]   ;;  %14 = vst.msk [vmem:[#allocation0] sm:$0x3] %vm13_vm0, %v12_v4  }
   0xe   :  { %25 = vrot.lane.b32.xlu0 %v24_v5, %s50_s15 }
  0x7c   :  { %v19_v6 = vpop.permute.xlu0 %18   ;;  %v33_v7 = vpop.permute.xlu1 %32  }
  0x7d   :  { %21 = vst.msk [vmem:[#allocation0] sm:$0x3] %vm20_vm1, %v19_v6  }
  0x80   :  { %v26_v8 = vpop.permute.xlu0 %25  }
  0x81   :  { %28 = vst.msk [vmem:[#allocation0] sm:$0x3] %vm27_vm2, %v26_v8  }
  0x82   :  { %35 = vst.msk [vmem:[#allocation0] sm:$0x3] %vm34_vm3, %v33_v7  }
  0x89   :  { %v40_v9 = vld [vmem:[#allocation0] sm:$0x3] }
  0x8a   :  { %43 = vst [vmem:[%s71_s1] sm:$0x3] %v40_v9 }

// kernel: tile.14
= control target key start
LH: loop header
LB: loop body
LE: loop exit
PB: predicated region body
PF: predicated region fallthrough
CT: control target
= control target key end

     0   :  { %s8_s6 = smov 3  ;;  %s22_s11 = smov 3  ;;  %vm3_vm0 = vcmask 130048   ;;  %vm12_vm1 = vcmask 1048448   ;;  %vm19_vm2 = vcmask 917248   ;;  %vm26_vm3 = vcmask 786048   ;;  %s132_s0 = inlined_call_operand.vmem [shape: f32[2,9,16], index: 0, kind: input, shape index: {}]   ;;  %s133_s1 = inlined_call_operand.vmem [shape: f32[2,144], index: 1, kind: output, shape index: {}]  }
   0x1   :  { %v2_v0 = vld [vmem:[%s132_s0] ss:$8 sm:$0xf]   ;;  %v70_v1 = vld [vmem:[%s132_s0 + $0x7] ss:$16 sm:%s8_s6]   ;;  %s85_s12 = smov 112  }
   0x2   :  { %10 = vrot.lane.b32.xlu0 %v70_v1, %s85_s12  ;;  %v72_v2 = vld [vmem:[%s132_s0 + $0x5] ss:$16 sm:%s22_s11]   ;;  %s15_s15 = smov 3  ;;  %4 = vst.msk [vmem:[#allocation0] ss:$8 sm:$0x3] %vm3_vm0, %v2_v0  }
   0x3   :  { %6 = vst.msk [vmem:[#allocation0 - $0xf] ss:$8 sm:$0xc] %vm3_vm0, %v2_v0   ;;  %s86_s16 = smov 80   ;;  %v71_v3 = vld [vmem:[%s132_s0 + $0x6] ss:$16 sm:%s15_s15]  }
   0x4   :  { %24 = vrot.lane.b32.xlu1 %v72_v2, %s86_s16  ;;  %s29_s19 = smov 3  ;;  %s36_s22 = smov 3  ;;  %vm33_vm4 = vcmask 654848   ;;  %vm40_vm5 = vcmask 523648   ;;  %vm47_vm6 = vcmask 392448   ;;  %vm54_vm7 = vcmask 261248  }
   0x5   :  { %v73_v4 = vld [vmem:[%s132_s0 + $0x4] ss:$16 sm:%s29_s19]   ;;  %s43_s23 = smov 3  ;;  %s87_s24 = smov 96   ;;  %v74_v5 = vld [vmem:[%s132_s0 + $0x3] ss:$16 sm:%s36_s22]  }
   0x6   :  { %17 = vrot.lane.b32.xlu0 %v71_v3, %s87_s24  ;;  %s88_s25 = smov 64   ;;  %v75_v6 = vld [vmem:[%s132_s0 + $0x2] ss:$16 sm:%s43_s23]   ;;  %s50_s30 = smov 3 }
   0x7   :  { %s89_s2 = smov 48   ;;  %s90_s5 = smov 32   ;;  %v76_v8 = vld [vmem:[%s132_s0 + $0x1] ss:$16 sm:%s50_s30]  }
   0x8   :  { %31 = vrot.lane.b32.xlu1 %v73_v4, %s88_s25  ;;  %s91_s0 = smov 16  }
   0xa   :  { %v65_v7 = vld [vmem:[#allocation0 + $0x8] sm:$0x3]  ;;  %38 = vrot.lane.b32.xlu0 %v74_v5, %s89_s2 }
   0xb   :  { %77 = vst [vmem:[%s133_s1 + $0x2] sm:$0x3] %v65_v7 }
   0xc   :  { %45 = vrot.lane.b32.xlu1 %v75_v6, %s90_s5 }
   0xe   :  { %52 = vrot.lane.b32.xlu0 %v76_v8, %s91_s0 }
  0x74   :  { %v11_v9 = vpop.permute.xlu0 %10  }
  0x75   :  { %13 = vst.msk [vmem:[#allocation0] sm:$0x3] %vm12_vm1, %v11_v9  }
  0x76   :  { %v25_v10 = vpop.permute.xlu1 %24  }
  0x78   :  { %v18_v11 = vpop.permute.xlu0 %17  }
  0x79   :  { %20 = vst.msk [vmem:[#allocation0] sm:$0x3] %vm19_vm2, %v18_v11  }
  0x7a   :  { %v32_v12 = vpop.permute.xlu1 %31   ;;  %27 = vst.msk [vmem:[#allocation0] sm:$0x3] %vm26_vm3, %v25_v10  }
  0x7b   :  { %34 = vst.msk [vmem:[#allocation0] sm:$0x3] %vm33_vm4, %v32_v12  }
  0x7c   :  { %v39_v13 = vpop.permute.xlu0 %38  }
  0x7d   :  { %41 = vst.msk [vmem:[#allocation0] sm:$0x3] %vm40_vm5, %v39_v13  }
  0x7e   :  { %v46_v14 = vpop.permute.xlu1 %45  }
  0x7f   :  { %48 = vst.msk [vmem:[#allocation0] sm:$0x3] %vm47_vm6, %v46_v14  }
  0x80   :  { %v53_v15 = vpop.permute.xlu0 %52  }
  0x81   :  { %55 = vst.msk [vmem:[#allocation0] sm:$0x3] %vm54_vm7, %v53_v15  }
  0x88   :  { %v60_v16 = vld [vmem:[#allocation0] sm:$0x3] }
  0x89   :  { %63 = vst [vmem:[%s133_s1] sm:$0x3] %v60_v16 }

// kernel: haarconvb_forward.1
= control target key start
LH: loop header
LB: loop body
LE: loop exit
PB: predicated region body
PF: predicated region fallthrough
CT: control target
= control target key end

     0   :  { %13 = vsyncpa [#allocation3], 0  ;;  %s2917_s0 = inlined_call_operand.vmem [shape: bf16[2,4,64,16], index: 0, kind: input, shape index: {}]   ;;  %s2918_s1 = inlined_call_operand.vmem [shape: f32[2,1,3,8,16], index: 1, kind: input, shape index: {}]   ;;  %s2919_s2 = inlined_call_operand.vmem [shape: f32[64,1], index: 2, kind: input, shape index: {}]   ;;  %s2920_s3 = inlined_call_operand.vmem [shape: f32[1,16], index: 3, kind: input, shape index: {}]   ;;  %s2921_s4 = inlined_call_operand.vmem [shape: f32[1,16], index: 4, kind: input, shape index: {}]   ;;  %s2922_s5 = inlined_call_operand.vmem [shape: f32[2,208,1], index: 5, kind: input, shape index: {}]   ;;  %s2923_s6 = inlined_call_operand.vmem [shape: f32[208,16], index: 6, kind: input, shape index: {}]   ;;  %s2924_s7 = inlined_call_operand.vmem [shape: f32[1,16], index: 7, kind: input, shape index: {}]   ;;  %s2925_s8 = inlined_call_operand.hbm [shape: f32[2,64,16], index: 8, kind: output, shape index: {}]  }
   0x1   :  { %15 = vsyncpa [#allocation3 + $0x1], 0  ;;  %s1869_s27 = smov 0   ;;  %s1871_s28 = smov 0  }
   0x2   :  { %s1873_s29 = smov 0   ;;  %s1875_s30 = smov 0  }
   0x3   :  { %s1877_s9 = smov 0   ;;  %s1879_s10 = smov 0  }
   0x4 LB: > { %s1537_s11 = sadd.s32 4294967295, %s1811_s10   ;;  %s1538_s12 = sadd.s32 4294967294, %s1811_s10   ;;  %s1811_s10 = sphi %s1879_s10, %s21_s10   ;;  %s1807_s9 = sphi %s1877_s9, %s2973_s9   ;;  %s1803_s30 = sphi %s1875_s30, %s2972_s30   ;;  %s1799_s29 = sphi %s1873_s29, %s2971_s29   ;;  %s1795_s28 = sphi %s1871_s28, %s2970_s28   ;;  %s1791_s27 = sphi %s1869_s27, %s2969_s27  }
   0x5   : > { %s33_s13 = sadd.s32 1, %s1807_s9  ;;  %s229_s14 = sadd.s32 1, %s1799_s29 }
   0x6   : > { %p35_p0 = scmp.ge.s32.totalorder %s33_s13, 2  ;;  %p239_p1 = scmp.ne.s32.totalorder %s1799_s29, %s1795_s28 }
   0x7   : > { %p240_p2 = scmp.eq.s32.totalorder %s1537_s11, 1  ;;  %p245_p3 = scmp.ne.s32.totalorder %s1795_s28, %s1791_s27 }
   0x8   : > { %s2975_s13 = smov (%p35_p0, %s33_s13), 0  ;;  %p246_p5 = scmp.eq.s32.totalorder %s1538_s12, 1 }
   0x9   : > { %p1909_p4 = por %p240_p2, %p239_p1  ;;  %s224_s16 = ssub.s32 %s1807_s9, %s2975_s13 }
   0xa   : > { %p1541_p6 = scmp.ge.s32.totalorder %s1811_s10, 1  ;;  %p227_p7 = scmp.eq.s32.totalorder %s224_s16, 0 }
   0xb   : > { %p1916_p8 = por %p246_p5, %p245_p3  ;;  %p312_p9 = scmp.lt.s32.totalorder %s1811_s10, 3 }
   0xc   : > { %s1922_s18 = scalar_select %p227_p7, %s1799_s29, %s229_s14  }
   0xd   : > { %p313_p10 = pnand %p1541_p6, %p312_p9 }
   0xf   : > { %316 = sbr.rel (%p313_p10) target bundleno = 526 (0x20e), region = 52 }
  0x14   : > { %v603_v0 = vld [vmem:[%s2919_s2 + $0x20] sm:$0xff]  ;;  %p365_p11 = scmp.lt.s32.totalorder %s1803_s30, 1  ;;  %v2926_v2 = vmov 0   ;;  %v604_v3 = vld [vmem:[%s2919_s2 + $0x28] sm:$0xff]  ;;  %v602_v5 = vld [vmem:[%s2919_s2 + $0x18] sm:$0xff]  ;;  %vm617_vm0 = vcmask 1040384  }
  0x15   : > { %v599_v1 = vld [vmem:[%s2919_s2] sm:$0xff]  ;;  %1734 = vset.pattern.permute.xlu1 %v2926_v2  ;;  %1733 = vset.pattern.permute.xlu0 %v2926_v2  ;;  %v600_v4 = vld [vmem:[%s2919_s2 + $0x8] sm:$0xff]  ;;  %v601_v6 = vld [vmem:[%s2919_s2 + $0x10] sm:$0xff]  ;;  %s1815_s16 = smov 32   ;;  %s1816_s19 = smov 64   ;;  %vm985_vm1 = vcmask 130048  }
  0x16   : > { %663 = vperm.xlu1 %1734, %v603_v0   ;;  %643 = vperm.xlu0 %1733, %v599_v1   ;;  %s1942_s11 = scalar_select %p365_p11, %s1803_s30, 1  ;;  %v606_v7 = vld [vmem:[%s2919_s2 + $0x38] sm:$0xff]  ;;  %v605_v8 = vld [vmem:[%s2919_s2 + $0x30] sm:$0xff]  ;;  %v1979_v19 = vld [vmem:[%s2920_s3] ss:$0 sm:$0xff]  ;;  %vm998_vm2 = vcmask 261120  }
  0x17   : > { %1328 = vmatprep.subr.bf16.mxu0 %v2926_v2  ;;  %1640 = vmatprep.subr.bf16.mxu1 %v2926_v2  ;;  %v1995_v29 = vld [vmem:[%s2921_s4] ss:$0 sm:$0xff]  ;;  %s1819_s22 = smov 112   ;;  %s1820_s26 = smov 96   ;;  %vm1007_vm3 = vcmask 392192   ;;  %vm1016_vm4 = vcmask 523264  }
  0x18   : > { %s1667_s20 = smul.u32 208, %s1942_s11  ;;  %s1559_s14 = sshll.u32 %s1942_s11, 7  ;;  %vm1025_vm5 = vcmask 654336   ;;  %vm1034_vm6 = vcmask 785408   ;;  %vm1043_vm7 = vcmask 916480  }
  0x19   : > { %s1968_s21 = scalar_lea.vmem %s2917_s0, %s1559_s14  ;;  %s1666_s25 = smul.u32 24, %s1942_s11 }
  0x1a   : > { %668 = vperm.xlu1 %1734, %v604_v3   ;;  %648 = vperm.xlu0 %1733, %v600_v4   ;;  %s1960_s12 = scalar_lea.vmem %s2922_s5, %s1667_s20  ;;  %v1625_v11 = vld [vmem:[%s1968_s21 + $0x8] sm:$0xff]   ;;  %v1626_v16 = vld [vmem:[%s1968_s21 + $0x10] sm:$0xff]   ;;  %v2019_v47 = vld [vmem:[%s1968_s21] sm:$0xff]   ;;  %s1818_s20 = smov 48  }
  0x1b   : > { %v1133_v9 = vld [vmem:[%s1960_s12 + $0x78] sm:$0xff]  ;;  %v1132_v10 = vld [vmem:[%s1960_s12 + $0x70] sm:$0xff]  ;;  %v1629_v12 = vld [vmem:[%s1968_s21 + $0x28] sm:$0xff]   ;;  %v1568_v15 = vunpack.c.h.bf16 %v1625_v11  ;;  %v1571_v23 = vunpack.c.l.bf16 %v1626_v16  ;;  %v1567_v33 = vunpack.c.l.bf16 %v1625_v11  ;;  %v1572_v44 = vunpack.c.h.bf16 %v1626_v16  ;;  %s2227_s14 = scalar_lea.vmem %s2918_s1, %s1666_s25 }
  0x1c   : > { %v1131_v13 = vld [vmem:[%s1960_s12 + $0x68] sm:$0xff]  ;;  %v1130_v14 = vld [vmem:[%s1960_s12 + $0x60] sm:$0xff]  ;;  %v1584_v17 = vunpack.c.h.bf16 %v1629_v12  ;;  %v1630_v18 = vld [vmem:[%s1968_s21 + $0x30] sm:$0xff]   ;;  %v1583_v34 = vunpack.c.l.bf16 %v1629_v12  ;;  %v1563_v59 = vunpack.c.l.bf16 %v2019_v47 }
  0x1d   : > { %v1982_v20 = vld [vmem:[%s1968_s21 + $0x48] sm:$0xff]   ;;  %v1129_v21 = vld [vmem:[%s1960_s12 + $0x58] sm:$0xff]  ;;  %v1128_v22 = vld [vmem:[%s1960_s12 + $0x50] sm:$0xff]  ;;  %v1587_v24 = vunpack.c.l.bf16 %v1630_v18  ;;  %v465_v27 = vmul.f32 %v1568_v15, %v1979_v19  ;;  %v466_v36 = vmul.f32 %v1571_v23, %v1979_v19  ;;  %v1588_v46 = vunpack.c.h.bf16 %v1630_v18 }
  0x1e   : > { %658 = vperm.xlu1 %1734, %v602_v5   ;;  %653 = vperm.xlu0 %1733, %v601_v6   ;;  %v1600_v25 = vunpack.c.h.bf16 %v1982_v20  ;;  %v1988_v26 = vld [vmem:[%s1968_s21 + $0x50] sm:$0xff]   ;;  %v487_v28 = vmul.f32 %v1584_v17, %v1979_v19  ;;  %v1998_v30 = vld [vmem:[%s1968_s21 + $0x68] sm:$0xff]   ;;  %v1126_v32 = vld [vmem:[%s1960_s12 + $0x40] sm:$0xff]  ;;  %v464_v49 = vmul.f32 %v1567_v33, %v1979_v19  ;;  %v486_v50 = vmul.f32 %v1583_v34, %v1979_v19 }
  0x1f   : > { %v1127_v31 = vld [vmem:[%s1960_s12 + $0x48] sm:$0xff]  ;;  %v1603_v35 = vunpack.c.l.bf16 %v1988_v26  ;;  %v488_v37 = vmul.f32 %v1587_v24, %v1979_v19  ;;  %v1616_v38 = vunpack.c.h.bf16 %v1998_v30  ;;  %v2007_v39 = vld [vmem:[%s1968_s21 + $0x70] sm:$0xff]   ;;  %v2010_v40 = vadd.f32 %v1995_v29, %v465_v27  ;;  %v1125_v43 = vld [vmem:[%s1960_s12 + $0x38] sm:$0xff] }
  0x20   : > { %v2013_v41 = vadd.f32 %v1995_v29, %v487_v28  ;;  %v503_v42 = vmul.f32 %v1600_v25, %v1979_v19  ;;  %v1124_v45 = vld [vmem:[%s1960_s12 + $0x30] sm:$0xff]  ;;  %v2022_v48 = vld [vmem:[%s1968_s21 + $0x20] sm:$0xff]   ;;  %v1619_v51 = vunpack.c.l.bf16 %v2007_v39  ;;  %v2028_v52 = vadd.f32 %v1995_v29, %v466_v36  ;;  %v1123_v62 = vld [vmem:[%s1960_s12 + $0x28] sm:$0xff] }
  0x21   : > { %v2031_v53 = vadd.f32 %v1995_v29, %v488_v37  ;;  %v504_v54 = vmul.f32 %v1603_v35, %v1979_v19  ;;  %v519_v56 = vmul.f32 %v1616_v38, %v1979_v19  ;;  %v467_v58 = vmul.f32 %v1572_v44, %v1979_v19  ;;  %v2044_v61 = vld [vmem:[%s1968_s21 + $0x40] sm:$0xff]   ;;  %v1627_v11 = vld [vmem:[%s1968_s21 + $0x18] sm:$0xff]   ;;  %v1120_v17 = vld [vmem:[%s1960_s12 + $0x10] sm:$0xff] }
  0x22   : > { %678 = vperm.xlu1 %1734, %v606_v7   ;;  %673 = vperm.xlu0 %1733, %v605_v8   ;;  %v2035_v55 = vadd.f32 %v1995_v29, %v503_v42  ;;  %v535_v57 = vadd.f32 %v2013_v41, %v2010_v40  ;;  %v1579_v60 = vunpack.c.l.bf16 %v2022_v48  ;;  %v1122_v63 = vld [vmem:[%s1960_s12 + $0x20] sm:$0xff]  ;;  %v1604_v0 = vunpack.c.h.bf16 %v1988_v26  ;;  %v1631_v12 = vld [vmem:[%s1968_s21 + $0x38] sm:$0xff]   ;;  %v1119_v42 = vld [vmem:[%s1960_s12 + $0x8] sm:$0xff] }
  0x23   : > { %v489_v1 = vmul.f32 %v1588_v46, %v1979_v19  ;;  %v2051_v3 = vadd.f32 %v1995_v29, %v464_v49  ;;  %v2054_v4 = vadd.f32 %v1995_v29, %v486_v50  ;;  %v2057_v5 = vadd.f32 %v1995_v29, %v504_v54  ;;  %v1121_v16 = vld [vmem:[%s1960_s12 + $0x18] sm:$0xff]  ;;  %v2084_v23 = vld [vmem:[%s1968_s21 + $0x60] sm:$0xff]  }
  0x24   : > { %v520_v6 = vmul.f32 %v1619_v51, %v1979_v19  ;;  %v536_v7 = vadd.f32 %v2031_v53, %v2028_v52  ;;  %v2063_v8 = vadd.f32 %v1995_v29, %v519_v56  ;;  %v484_v15 = vmul.f32 %v1579_v60, %v1979_v19  ;;  %v1639_v50 = vld [vmem:[%s1968_s21 + $0x78] sm:$0xff]  }
  0x25   : > { %v2075_v18 = vadd.f32 %v1995_v29, %v467_v58  ;;  %v2088_v24 = vadd.f32 %v2054_v4, %v2051_v3  ;;  %v1575_v27 = vunpack.c.l.bf16 %v1627_v11  ;;  %v1591_v28 = vunpack.c.l.bf16 %v1631_v12 }
  0x26   : > { %1221 = vperm.xlu1 %1734, %v1133_v9   ;;  %1216 = vperm.xlu0 %1733, %v1132_v10   ;;  %v543_v9 = vadd.f32 %v535_v57, %v2035_v55  ;;  %v1595_v10 = vunpack.c.l.bf16 %v2044_v61  ;;  %v2091_v25 = vadd.f32 %v1995_v29, %v520_v6  ;;  %v544_v26 = vadd.f32 %v536_v7, %v2057_v5 }
  0x27   : > { %v1564_v33 = vunpack.c.h.bf16 %v2019_v47  ;;  %v1580_v34 = vunpack.c.h.bf16 %v2022_v48  ;;  %v1611_v37 = vunpack.c.l.bf16 %v2084_v23  ;;  %v1596_v44 = vunpack.c.h.bf16 %v2044_v61 }
  0x28   : > { %v500_v35 = vmul.f32 %v1595_v10, %v1979_v19  ;;  %v1592_v46 = vunpack.c.h.bf16 %v1631_v12  ;;  %v552_v48 = vadd.f32 %v544_v26, %v2091_v25  ;;  %v1612_v49 = vunpack.c.h.bf16 %v2084_v23 }
  0x29   : > { %v468_v51 = vmul.f32 %v1575_v27, %v1979_v19  ;;  %v490_v54 = vmul.f32 %v1591_v28, %v1979_v19  ;;  %v463_v57 = vmul.f32 %v1564_v33, %v1979_v19  ;;  %v485_v58 = vmul.f32 %v1580_v34, %v1979_v19  ;;  %v1141_v28 = vld [vmem:[%s1960_s12 + $0xb8] sm:$0xff] }
  0x2a   : > { %1211 = vperm.xlu1 %1734, %v1131_v13   ;;  %1206 = vperm.xlu0 %1733, %v1130_v14   ;;  %v1620_v13 = vunpack.c.h.bf16 %v2007_v39  ;;  %v462_v14 = vmul.f32 %v1563_v59, %v1979_v19  ;;  %v2107_v39 = vadd.f32 %v1995_v29, %v484_v15  ;;  %v2122_v59 = vadd.f32 %v1995_v29, %v500_v35 }
  0x2b   : > { %v516_v60 = vmul.f32 %v1611_v37, %v1979_v19  ;;  %v1623_v6 = vunpack.c.l.bf16 %v1639_v50  ;;  %v2137_v12 = vadd.f32 %v1995_v29, %v490_v54  ;;  %v2144_v15 = vadd.f32 %v1995_v29, %v463_v57  ;;  %v1139_v57 = vld [vmem:[%s1960_s12 + $0xa8] sm:$0xff] }
  0x2c   : > { %v2100_v36 = vmul.f32 %v1620_v13, %v1979_v19  ;;  %v2104_v38 = vadd.f32 %v1995_v29, %v462_v14  ;;  %v1615_v13 = vunpack.c.l.bf16 %v1998_v30  ;;  %v2141_v14 = vmul.f32 0.25, %v552_v48 }
  0x2d   : > { %v2151_v23 = vadd.f32 %v1995_v29, %v516_v60  ;;  %v1624_v30 = vunpack.c.h.bf16 %v1639_v50  ;;  %v522_v34 = vmul.f32 %v1623_v6, %v1979_v19 }
  0x2e   : > { %1201 = vperm.xlu1 %1734, %v1129_v21   ;;  %1196 = vperm.xlu0 %1733, %v1128_v22   ;;  %v2078_v21 = vadd.f32 %v1995_v29, %v489_v1  ;;  %v2081_v22 = vmul.f32 %v1604_v0, %v1979_v19  ;;  %v532_v61 = vadd.f32 %v2107_v39, %v2104_v38  ;;  %v1143_v0 = vld [vmem:[%s1960_s12 + $0xc8] sm:$0xff]  ;;  %v1142_v1 = vld [vmem:[%s1960_s12 + $0xc0] sm:$0xff]  ;;  %v762_v48 = vrot.slane %v2141_v14, 7 }
  0x30   : > { %v540_v26 = vadd.f32 %v532_v61, %v2122_v59 }
  0x32   : > { %1191 = vperm.xlu1 %1734, %v1127_v31   ;;  %1186 = vperm.xlu0 %1733, %v1126_v32   ;;  %v1635_v31 = vld [vmem:[%s1968_s21 + $0x58] sm:$0xff]   ;;  %v551_v32 = vadd.f32 %v543_v9, %v2063_v8  ;;  %v491_v9 = vmul.f32 %v1592_v46, %v1979_v19  ;;  %v537_v46 = vadd.f32 %v2078_v21, %v2075_v18  ;;  %s1817_s21 = smov 80  }
  0x33   : > { %v1607_v47 = vunpack.c.l.bf16 %v1635_v31  ;;  %v548_v54 = vadd.f32 %v540_v26, %v2151_v23 }
  0x34   : > { %v2117_v56 = vmul.f32 0.25, %v551_v32  ;;  %v2161_v33 = vadd.f32 %v1995_v29, %v491_v9 }
  0x35   : > { %v506_v10 = vmul.f32 %v1607_v47, %v1979_v19  ;;  %v517_v47 = vmul.f32 %v1612_v49, %v1979_v19  ;;  %v523_v49 = vmul.f32 %v1624_v30, %v1979_v19 }
  0x36   : > { %1181 = vperm.xlu1 %1734, %v1125_v43   ;;  %1176 = vperm.xlu0 %1733, %v1124_v45   ;;  %v1118_v43 = vld [vmem:[%s1960_s12] sm:$0xff]  ;;  %v1576_v45 = vunpack.c.h.bf16 %v1627_v11  ;;  %v2134_v11 = vadd.f32 %v1995_v29, %v468_v51  ;;  %v760_v35 = vrot.slane %v2117_v56, 7 }
  0x37   : > { %v2166_v37 = vadd.f32 %v1995_v29, %v506_v10  ;;  %v2216_v10 = vmul.f32 0.25, %v548_v54  ;;  %v2256_v54 = vsub.f32 %v2063_v8, %v2117_v56 }
  0x38   : > { %v469_v7 = vmul.f32 %v1576_v45, %v1979_v19  ;;  %v2176_v45 = vadd.f32 %v1995_v29, %v2081_v22  ;;  %v1138_v22 = vld [vmem:[%s1960_s12 + $0xa0] sm:$0xff]  ;;  %v2201_v61 = vsel %vm617_vm0, %v760_v35, %v762_v48 }
  0x39   : > { %2943 = vst [vmem:[#allocation5_spill] sm:$0xff] %v2256_v54 }
  0x3a   : > { %1171 = vperm.xlu1 %1734, %v1123_v62   ;;  %1166 = vperm.xlu0 %1733, %v1122_v63   ;;  %v1608_v62 = vunpack.c.h.bf16 %v1635_v31  ;;  %v1599_v63 = vunpack.c.l.bf16 %v1982_v20  ;;  %v1140_v31 = vld [vmem:[%s1960_s12 + $0xb0] sm:$0xff]  ;;  %v2158_v32 = vadd.f32 %v1995_v29, %v469_v7  ;;  %v545_v6 = vadd.f32 %v537_v46, %v2176_v45 }
  0x3b   : > { %v525_v7 = vadd.f32 %v1995_v29, %v517_v47 }
  0x3c   : > { %v502_v20 = vmul.f32 %v1599_v63, %v1979_v19  ;;  %v507_v27 = vmul.f32 %v1608_v62, %v1979_v19  ;;  %v539_v60 = vadd.f32 %v2161_v33, %v2158_v32  ;;  %v530_v62 = vadd.f32 %v1995_v29, %v522_v34  ;;  %v1135_v34 = vld [vmem:[%s1960_s12 + $0x88] sm:$0xff] }
  0x3e   : > { %1161 = vperm.xlu1 %1734, %v1121_v16   ;;  %1156 = vperm.xlu0 %1733, %v1120_v17   ;;  %v2147_v16 = vadd.f32 %v1995_v29, %v485_v58  ;;  %v501_v17 = vmul.f32 %v1596_v44, %v1979_v19  ;;  %v518_v44 = vmul.f32 %v1615_v13, %v1979_v19  ;;  %v1137_v13 = vld [vmem:[%s1960_s12 + $0x98] sm:$0xff] }
  0x3f   : > { %v2191_v58 = vadd.f32 %v1995_v29, %v507_v27  ;;  %v2232_v27 = vsub.f32 %v2035_v55, %v2117_v56 }
  0x40   : > { %v2183_v50 = vadd.f32 %v1995_v29, %v501_v17  ;;  %v533_v51 = vadd.f32 %v2147_v16, %v2144_v15  ;;  %v2221_v17 = vadd.f32 %v1995_v29, %v523_v49  ;;  %v2267_v49 = vsub.f32 %v2151_v23, %v2216_v10 }
  0x42   : > { %1151 = vperm.xlu1 %1734, %v1119_v42   ;;  %1146 = vperm.xlu0 %1733, %v1118_v43   ;;  %v538_v42 = vadd.f32 %v2137_v12, %v2134_v11  ;;  %v2171_v43 = vadd.f32 %v1995_v29, %v502_v20  ;;  %v541_v9 = vadd.f32 %v533_v51, %v2183_v50  ;;  %v1136_v20 = vld [vmem:[%s1960_s12 + $0x90] sm:$0xff] }
  0x43   : > { %2944 = vst [vmem:[#allocation6_spill] sm:$0xff] %v2267_v49 }
  0x44   : > { %v546_v63 = vadd.f32 %v538_v42, %v2166_v37  ;;  %v542_v19 = vadd.f32 %v2088_v24, %v2171_v43  ;;  %v547_v24 = vadd.f32 %v539_v60, %v2191_v58  ;;  %v1134_v42 = vld [vmem:[%s1960_s12 + $0x80] sm:$0xff]  ;;  %s1814_s12 = smov 16  }
  0x46   : > { %1271 = vperm.xlu1 %1734, %v1143_v0   ;;  %1266 = vperm.xlu0 %1733, %v1142_v1   ;;  %v2207_v0 = vadd.f32 %v1995_v29, %v518_v44  ;;  %v529_v1 = vadd.f32 %v1995_v29, %v2100_v36  ;;  %v554_v36 = vadd.f32 %v546_v63, %v530_v62  ;;  %v596_v44 = vld [vmem:[%s2227_s14] sm:$0xff]  ;;  %v597_v63 = vld [vmem:[%s2227_s14 + $0x8] sm:$0xff] }
  0x47   : > { %v2236_v29 = vsub.f32 %v2057_v5, %v2141_v14  ;;  %v555_v46 = vadd.f32 %v547_v24, %v2221_v17 }
  0x48   : > { %v550_v26 = vadd.f32 %v542_v19, %v2207_v0  ;;  %v553_v30 = vadd.f32 %v545_v6, %v529_v1  ;;  %v2246_v47 = vmul.f32 0.25, %v554_v36  ;;  %v618_v19 = vrot.slane %v597_v63, 7 }
  0x49   : > { %v807_v5 = vpack.c.bf16 %v2236_v29, %v2232_v27  ;;  %v2273_v8 = vmul.f32 0.25, %v555_v46 }
  0x4a   : > { %1261 = vperm.xlu1 %1734, %v1141_v28   ;;  %1256 = vperm.xlu0 %1733, %v1140_v31   ;;  %v549_v28 = vadd.f32 %v541_v9, %v525_v7  ;;  %v2240_v31 = vsub.f32 %v2122_v59, %v2216_v10  ;;  %v2248_v55 = vmul.f32 0.25, %v550_v26  ;;  %v2250_v51 = vmul.f32 0.25, %v553_v30 }
  0x4b   : > { %v2260_v59 = vsub.f32 %v2091_v25, %v2141_v14  ;;  %v2270_v60 = vsub.f32 %v530_v62, %v2246_v47  ;;  %v587_v24 = vsub.f32 %v2191_v58, %v2273_v8 }
  0x4c   : > { %v2279_v6 = vsub.f32 %v2171_v43, %v2248_v55  ;;  %v809_v43 = vpack.c.bf16 %v2267_v49, %v597_v63  ;;  %v2299_v36 = vsub.f32 %v529_v1, %v2250_v51 }
  0x4d   : > { %2945 = vst [vmem:[#allocation7_spill] sm:$0xff] %v2270_v60  ;;  %v2284_v23 = vrot.slane %v2270_v60, 7  ;;  %v811_v62 = vpack.c.bf16 %v2260_v59, %v2256_v54 }
  0x4e   : > { %1251 = vperm.xlu1 %1734, %v1139_v57   ;;  %1246 = vperm.xlu0 %1733, %v1138_v22   ;;  %v2262_v57 = vmul.f32 0.25, %v549_v28  ;;  %v805_v22 = vpack.c.bf16 %v2240_v31, %v596_v44  ;;  %v569_v44 = vsub.f32 %v2075_v18, %v2250_v51  ;;  %v2336_v18 = vsub.f32 %v2031_v53, %v2141_v14 }
  0x4f   : > { %v2314_v28 = vsel %vm617_vm0, %v2284_v23, %v618_v19 }
  0x50   : > { %v2310_v58 = vsub.f32 %v525_v7, %v2262_v57  ;;  %v564_v7 = vsub.f32 %v2104_v38, %v2216_v10  ;;  %v837_v46 = vpack.c.bf16 %v2262_v57, %v2216_v10  ;;  %v2340_v38 = vsub.f32 %v2078_v21, %v2250_v51 }
  0x52   : > { %1241 = vperm.xlu1 %1734, %v1137_v13   ;;  %1236 = vperm.xlu0 %1733, %v1136_v20   ;;  %v586_v13 = vsub.f32 %v2166_v37, %v2246_v47  ;;  %v2291_v20 = vrot.slane %v2267_v49, 7  ;;  %v823_v53 = vpack.c.bf16 %v2340_v38, %v2336_v18 }
  0x54   : > { %v2303_v37 = vpack.c.bf16 %v587_v24, %v586_v13  ;;  %v2307_v30 = vsel %vm617_vm0, %v618_v19, %v2291_v20  ;;  %v2350_v19 = vsub.f32 %v2147_v16, %v2262_v57  ;;  %v585_v24 = vsub.f32 %v2176_v45, %v2250_v51 }
  0x56   : > { %1231 = vperm.xlu1 %1734, %v1135_v34   ;;  %1226 = vperm.xlu0 %1733, %v1134_v42   ;;  %v839_v34 = vpack.c.bf16 %v2250_v51, %v2141_v14  ;;  %v568_v42 = vsub.f32 %v2028_v52, %v2141_v14 }
  0x5a   : > { %861 = vrot.lane.b32.xlu1 %v807_v5, %s1814_s12  ;;  %857 = vrot.lane.b32.xlu0 %v805_v22, %s1814_s12  ;;  %v565_v5 = vsub.f32 %v2144_v15, %v2262_v57  ;;  %v819_v22 = vpack.c.bf16 %v569_v44, %v568_v42  ;;  %v2346_v15 = vsub.f32 %v2107_v39, %v2216_v10 }
  0x5b   : > { %v847_v39 = vpack.c.bf16 %v2141_v14, %v2117_v56  ;;  %v808_v44 = vpack.c.bf16 %v586_v13, %v585_v24 }
  0x5c   : > { %v817_v63 = vpack.c.bf16 %v565_v5, %v564_v7  ;;  %v821_v21 = vpack.c.bf16 %v2350_v19, %v2346_v15  ;;  %v2384_v7 = vsub.f32 %v2221_v17, %v2273_v8  ;;  %v570_v17 = vsub.f32 %v2134_v11, %v2246_v47 }
  0x5d   : > { %v838_v5 = vpack.c.bf16 %v2117_v56, %v2248_v55 }
  0x5e   : > { %873 = vrot.lane.b32.xlu1 %v811_v62, %s1815_s16  ;;  %869 = vrot.lane.b32.xlu0 %v809_v43, %s1815_s16  ;;  %v2359_v62 = vld [vmem:[%s2227_s14 + $0x10] sm:$0xff]  ;;  %v581_v43 = vsub.f32 %v2183_v50, %v2262_v57  ;;  %v2380_v50 = vsub.f32 %v2207_v0, %v2248_v55  ;;  %v840_v0 = vpack.c.bf16 %v2273_v8, %v2246_v47  ;;  %s1560_s14 = sshll.u32 %s1803_s30, 10 }
  0x5f   : > { %v845_v16 = vpack.c.bf16 %v2216_v10, %v2359_v62  ;;  %s2862_s23 = scalar_lea.hbm %s2925_s8, %s1560_s14 }
  0x60   : > { %v829_v42 = vpack.c.bf16 %v581_v43, %v2240_v31  ;;  %v806_v45 = vpack.c.bf16 %v2279_v6, %v581_v43  ;;  %2946 = vst [vmem:[#allocation8_spill] sm:$0xff] %v2380_v50  ;;  %v810_v31 = vpack.c.bf16 %v2380_v50, %v2310_v58  ;;  %v2933_v43 = vrot.slane %v2350_v19, 7 }
  0x62   : > { %945 = vrot.lane.b32.xlu1 %v839_v34, %s1814_s12  ;;  %941 = vrot.lane.b32.xlu0 %v837_v46, %s1814_s12  ;;  %v831_v34 = vpack.c.bf16 %v585_v24, %v2236_v29  ;;  %v812_v29 = vpack.c.bf16 %v2270_v60, %v2299_v36  ;;  %v567_v46 = vsub.f32 %v2010_v40, %v2117_v56  ;;  %v623_v24 = vrot.slane %v2380_v50, 7 }
  0x63   : > { %v2414_v40 = vsub.f32 %v2013_v41, %v2117_v56  ;;  %v2487_v56 = vsub.f32 %v2137_v12, %v2246_v47  ;;  %v2949_v50 = vrot.slane %v2350_v19, 7  ;;  %v1104_v19 = vld [vmem:[%s2923_s6 + $0x60] sm:$0xff] }
  0x66   : > { %897 = vrot.lane.b32.xlu1 %v819_v22, %s1816_s19  ;;  %893 = vrot.lane.b32.xlu0 %v817_v63, %s1816_s19  ;;  %v571_v22 = vsub.f32 %v2158_v32, %v2273_v8  ;;  %v566_v63 = vsub.f32 %v2051_v3, %v2248_v55  ;;  %v2418_v32 = vsub.f32 %v2161_v33, %v2273_v8  ;;  %v706_v3 = vrot.slane %v2336_v18, 7 }
  0x67   : > { %v2928_v33 = vrot.slane %v2273_v8, 7  ;;  %v755_v18 = vrot.slane %v2216_v10, 7 }
  0x68   : > { %v820_v11 = vpack.c.bf16 %v571_v22, %v570_v17  ;;  %v2934_v41 = vrot.slane %v2418_v32, 7  ;;  %v2948_v60 = vrot.slane %v2418_v32, 7 }
  0x6a   : > { %909 = vrot.lane.b32.xlu1 %v823_v53, %s1817_s21  ;;  %905 = vrot.lane.b32.xlu0 %v821_v21, %s1817_s21  ;;  %v818_v53 = vpack.c.bf16 %v567_v46, %v566_v63  ;;  %v2936_v21 = vrot.slane %v2340_v38, 7 }
  0x6e   : > { %969 = vrot.lane.b32.xlu1 %v847_v39, %s1818_s20  ;;  %965 = vrot.lane.b32.xlu0 %v845_v16, %s1818_s20  ;;  %v699_v39 = vrot.slane %v2346_v15, 7  ;;  %v625_v16 = vrot.slane %v2256_v54, 7  ;;  %v627_v15 = vrot.slane %v2260_v59, 7 }
  0x70   : > { %v2440_v17 = vsel %vm617_vm0, %v623_v24, %v625_v16  ;;  %v701_v46 = vsel %vm617_vm0, %v699_v39, %v2933_v43 }
  0x72   : > { %933 = vrot.lane.b32.xlu1 %v831_v34, %s1819_s22  ;;  %929 = vrot.lane.b32.xlu0 %v829_v42, %s1819_s22  ;;  %v2932_v34 = vrot.slane %v2414_v40, 7  ;;  %v2931_v42 = vrot.slane %v2250_v51, 7 }
  0x74   : > { %v707_v10 = vsel %vm617_vm0, %v2932_v34, %v706_v3  ;;  %v2456_v22 = vsel %vm617_vm0, %v762_v48, %v2931_v42 }
  0x76   : > { %863 = vrot.lane.b32.xlu1 %v808_v44, %s1814_s12  ;;  %859 = vrot.lane.b32.xlu0 %v806_v45, %s1814_s12  ;;  %v2929_v44 = vrot.slane %v2262_v57, 7  ;;  %v2930_v45 = vrot.slane %v2248_v55, 7 }
  0x78   : > { %v2461_v63 = vsel %vm617_vm0, %v755_v18, %v2929_v44  ;;  %v2474_v14 = vsel %vm617_vm0, %v2930_v45, %v760_v35 }
  0x7a   : > { %875 = vrot.lane.b32.xlu1 %v812_v29, %s1815_s16  ;;  %871 = vrot.lane.b32.xlu0 %v810_v31, %s1815_s16 }
  0x7e   : > { %947 = vrot.lane.b32.xlu1 %v840_v0, %s1814_s12  ;;  %943 = vrot.lane.b32.xlu0 %v838_v5, %s1814_s12  ;;  %v709_v0 = vsel %vm617_vm0, %v706_v3, %v2936_v21  ;;  %v721_v5 = vsel %vm617_vm0, %v2934_v41, %v699_v39  ;;  %v621_v3 = vrot.slane %v2310_v58, 7  ;;  %v628_v39 = vsel %vm617_vm0, %v625_v16, %v627_v15 }
  0x7f   : > { %v2935_v16 = vrot.slane %v2384_v7, 7 }
  0x80   : > { %v622_v41 = vsel %vm617_vm0, %v2291_v20, %v621_v3 }
  0x82   : > { %899 = vrot.lane.b32.xlu1 %v820_v11, %s1816_s19  ;;  %895 = vrot.lane.b32.xlu0 %v818_v53, %s1816_s19  ;;  %v777_v11 = vsel %vm617_vm0, %v2928_v33, %v755_v18  ;;  %v629_v53 = vrot.slane %v2299_v36, 7 }
  0x84   : > { %v630_v43 = vsel %vm617_vm0, %v627_v15, %v629_v53 }
  0x91   : > { %v664_v29 = vpop.permute.xlu1 %663  ;;  %v2434_v31 = vpop.permute.xlu0 %643 }
  0x92   : > { %v2477_v48 = vmul.f32 %v664_v29, %v2440_v17  ;;  %v2481_v13 = vmul.f32 %v2434_v31, %v2314_v28  ;;  %v726_v26 = vmul.f32 %v707_v10, %v664_v29  ;;  %v722_v9 = vmul.f32 %v721_v5, %v2434_v31 }
  0x93   : > { %v782_v2 = vmul.f32 %v2201_v61, %v664_v29  ;;  %v2494_v28 = vmul.f32 %v2474_v14, %v664_v29  ;;  %v2500_v5 = vsel %vm617_vm0, %v621_v3, %v623_v24  ;;  %v2514_v24 = vsub.f32 %v2054_v4, %v2248_v55 }
  0x94   : > { %v710_v4 = vrot.slane %v2487_v56, 7 }
  0x95   : > { %v669_v52 = vpop.permute.xlu1 %668  ;;  %v649_v1 = vpop.permute.xlu0 %648 }
  0x96   : > { %v727_v35 = vmul.f32 %v709_v0, %v669_v52  ;;  %v723_v25 = vmul.f32 %v701_v46, %v649_v1  ;;  %v783_v33 = vmul.f32 %v2456_v22, %v669_v52  ;;  %v2491_v44 = vmul.f32 %v669_v52, %v628_v39 }
  0x97   : > { %v2497_v10 = vmul.f32 %v2201_v61, %v669_v52  ;;  %v779_v0 = vmul.f32 %v2461_v63, %v649_v1  ;;  %v738_v3 = vmul.f32 %v649_v1, %v622_v41  ;;  %v2546_v21 = vmul.f32 %v649_v1, %v2307_v30 }
  0x98   : > { %v815_v45 = vpack.c.bf16 %v727_v35, %v726_v26  ;;  %v813_v12 = vpack.c.bf16 %v723_v25, %v722_v9  ;;  %v843_v42 = vpack.c.bf16 %v783_v33, %v782_v2  ;;  %v788_v2 = vrot.slane %v2359_v62, 7 }
  0x99   : > { %v2503_v46 = vpop.permute.xlu1 %658  ;;  %v2505_v34 = vpop.permute.xlu0 %653  ;;  %v778_v25 = vmul.f32 %v777_v11, %v2434_v31  ;;  %v736_v26 = vsel %vm617_vm0, %v2935_v16, %v2291_v20  ;;  %v766_v33 = vrot.slane %v2246_v47, 7  ;;  %v2535_v11 = vsel %vm617_vm0, %v629_v53, %v2284_v23 }
  0x9a   : > { %885 = vrot.lane.b32.xlu1 %v815_v45, %s1818_s20  ;;  %881 = vrot.lane.b32.xlu0 %v813_v12, %s1818_s20  ;;  %v2521_v9 = vmul.f32 %v2505_v34, %v622_v41  ;;  %v2531_v62 = vmul.f32 %v2503_v46, %v2500_v5  ;;  %v742_v45 = vmul.f32 %v669_v52, %v630_v43  ;;  %v702_v16 = vrot.slane %v2514_v24, 7 }
  0x9b   : > { %v841_v15 = vpack.c.bf16 %v779_v0, %v778_v25  ;;  %v789_v20 = vsel %vm617_vm0, %v788_v2, %v755_v18  ;;  %v741_v41 = vmul.f32 %v664_v29, %v628_v39  ;;  %v737_v53 = vmul.f32 %v736_v26, %v2434_v31  ;;  %v1107_v18 = vld [vmem:[%s2923_s6 + $0x78] sm:$0xff]  ;;  %v1106_v0 = vld [vmem:[%s2923_s6 + $0x70] sm:$0xff] }
  0x9c   : > { %v2947_v29 = vrot.slane %v2340_v38, 7  ;;  %v794_v61 = vmul.f32 %v789_v20, %v649_v1  ;;  %v712_v54 = vsel %vm617_vm0, %v710_v4, %v2948_v60  ;;  %v703_v49 = vsel %vm617_vm0, %v2949_v50, %v702_v16  ;;  %v1105_v60 = vld [vmem:[%s2923_s6 + $0x68] sm:$0xff] }
  0x9d   : > { %v2537_v35 = vpop.permute.xlu1 %678  ;;  %v2539_v12 = vpop.permute.xlu0 %673  ;;  %v825_v25 = vpack.c.bf16 %v738_v3, %v737_v53  ;;  %v2950_v1 = vrot.slane %v2414_v40, 7  ;;  %v802_v20 = vpack.c.bf16 %v2531_v62, %v2521_v9  ;;  %v724_v53 = vmul.f32 %v703_v49, %v2505_v34 }
  0x9e   : > { %957 = vrot.lane.b32.xlu1 %v843_v42, %s1815_s16  ;;  %953 = vrot.lane.b32.xlu0 %v841_v15, %s1815_s16  ;;  %v2551_v52 = vmul.f32 %v2539_v12, %v630_v43  ;;  %v2562_v30 = vmul.f32 %v2537_v35, %v2535_v11  ;;  %v827_v42 = vpack.c.bf16 %v742_v45, %v741_v41 }
  0x9f   : > { %v792_v43 = vsel %vm617_vm0, %v766_v33, %v788_v2  ;;  %v711_v39 = vsel %vm617_vm0, %v2947_v29, %v710_v4  ;;  %v801_v45 = vpack.c.bf16 %v2546_v21, %v2481_v13  ;;  %v705_v38 = vsel %vm617_vm0, %v702_v16, %v2950_v1 }
  0xa0   : > { %v793_v50 = vmul.f32 %v792_v43, %v2434_v31  ;;  %v804_v4 = vpack.c.bf16 %v2562_v30, %v2551_v52  ;;  %v2951_v16 = vrot.slane %v2250_v51, 7  ;;  %v725_v49 = vmul.f32 %v705_v38, %v2503_v46 }
  0xa1   : > { %v1222_v26 = vpop.permute.xlu1 %1221  ;;  %v1217_v15 = vpop.permute.xlu0 %1216  ;;  %v2954_v1 = vrot.slane %v2273_v8, 7  ;;  %v2956_v38 = vmov 0   ;;  %v2962_v21 = vpack.c.bf16 %v2299_v36, %v2260_v59 }
  0xa2   : > { %v1289_v3 = vmul.f32 %v1222_v26, %v1107_v18  ;;  %v1288_v2 = vmul.f32 %v1217_v15, %v1106_v0  ;;  %921 = vrot.lane.b32.xlu1 %v827_v42, %s1820_s26  ;;  %917 = vrot.lane.b32.xlu0 %v825_v25, %s1820_s26  ;;  %v2596_v18 = vsel %vm617_vm0, %v2951_v16, %v766_v33  ;;  %v2952_v0 = vrot.slane %v2248_v55, 7 }
  0xa3   : > { %v2953_v42 = vrot.slane %v2262_v57, 7  ;;  %v849_v29 = vpack.c.bf16 %v794_v61, %v793_v50  ;;  %v728_v26 = vmul.f32 %v711_v39, %v2539_v12  ;;  %v729_v15 = vmul.f32 %v712_v54, %v2537_v35  ;;  %v1103_v54 = vld [vmem:[%s2923_s6 + $0x58] sm:$0xff]  ;;  %v1102_v61 = vld [vmem:[%s2923_s6 + $0x50] sm:$0xff] }
  0xa4   : > { %v1307_v41 = vpack.c.bf16 %v1289_v3, %v1288_v2  ;;  %v768_v16 = vsel %vm617_vm0, %v766_v33, %v2954_v1  ;;  %v784_v50 = vmul.f32 %v2596_v18, %v2539_v12  ;;  %v1099_v1 = vld [vmem:[%s2923_s6 + $0x38] sm:$0xff] }
  0xa5   : > { %v2603_v31 = vsel %vm617_vm0, %v2953_v42, %v2952_v0  ;;  %v1212_v25 = vpop.permute.xlu1 %1211  ;;  %v1207_v43 = vpop.permute.xlu0 %1206  ;;  %v2955_v0 = vpack.c.bf16 %v2497_v10, %v2494_v28  ;;  %v781_v28 = vmul.f32 %v2474_v14, %v2503_v46  ;;  %v1101_v14 = vld [vmem:[%s2923_s6 + $0x48] sm:$0xff] }
  0xa6   : > { %v1287_v3 = vmul.f32 %v1212_v25, %v1105_v60  ;;  %v1286_v2 = vmul.f32 %v1207_v43, %v1104_v19  ;;  %1329 = vmatpush1.bf16.msra.mxu0 %v1307_v41  ;;  %1653 = vmatpush1.bf16.msra.mxu1 %v1307_v41  ;;  %v780_v8 = vmul.f32 %v2603_v31, %v2505_v34 }
  0xa7   : > { %981 = vrot.lane.b32.xlu1 %v2955_v0, %s1816_s19  ;;  %977 = vrot.lane.b32.xlu0 %v849_v29, %s1816_s19  ;;  %v816_v60 = vpack.c.bf16 %v729_v15, %v728_v26  ;;  %v814_v19 = vpack.c.bf16 %v725_v49, %v724_v53  ;;  %v785_v41 = vmul.f32 %v768_v16, %v2537_v35  ;;  %v1100_v53 = vld [vmem:[%s2923_s6 + $0x40] sm:$0xff]  ;;  %v1098_v16 = vld [vmem:[%s2923_s6 + $0x30] sm:$0xff] }
  0xa8   : > { %v1306_v39 = vpack.c.bf16 %v1287_v3, %v1286_v2  ;;  %1330 = vmatprep.subr.bf16.mxu0 %v2956_v38  ;;  %1641 = vmatprep.subr.bf16.mxu1 %v2956_v38  ;;  %v842_v49 = vpack.c.bf16 %v781_v28, %v780_v8  ;;  %v824_v0 = vpack.c.bf16 %v2418_v32, %v2487_v56  ;;  %v1096_v32 = vld [vmem:[%s2923_s6 + $0x20] sm:$0xff] }
  0xa9   : > { %v1202_v10 = vpop.permute.xlu1 %1201  ;;  %v1197_v33 = vpop.permute.xlu0 %1196  ;;  %v844_v15 = vpack.c.bf16 %v785_v41, %v784_v50  ;;  %v739_v41 = vmul.f32 %v2505_v34, %v2500_v5  ;;  %v1095_v5 = vld [vmem:[%s2923_s6 + $0x18] sm:$0xff] }
  0xaa   : > { %v1285_v42 = vmul.f32 %v1202_v10, %v1103_v54  ;;  %v1284_v25 = vmul.f32 %v1197_v33, %v1102_v61  ;;  %1331 = vmatpush1.bf16.msra.mxu0 %v1306_v39  ;;  %1654 = vmatpush1.bf16.msra.mxu1 %v1306_v39  ;;  %v822_v54 = vpack.c.bf16 %v2414_v40, %v2514_v24  ;;  %v2957_v33 = vrot.slane %v2384_v7, 7  ;;  %v1097_v40 = vld [vmem:[%s2923_s6 + $0x28] sm:$0xff] }
  0xab   : > { %887 = vrot.lane.b32.xlu1 %v816_v60, %s1818_s20  ;;  %883 = vrot.lane.b32.xlu0 %v814_v19, %s1818_s20 }
  0xac   : > { %v1305_v43 = vpack.c.bf16 %v1285_v42, %v1284_v25  ;;  %1332 = vmatprep.subr.bf16.mxu0 %v2956_v38  ;;  %1642 = vmatprep.subr.bf16.mxu1 %v2956_v38  ;;  %v733_v60 = vsel %vm617_vm0, %v2284_v23, %v2957_v33  ;;  %v743_v23 = vmul.f32 %v2539_v12, %v2535_v11  ;;  %v1115_v33 = vld [vmem:[%s2923_s6 + $0xb8] sm:$0xff] }
  0xad   : > { %v1192_v29 = vpop.permute.xlu1 %1191  ;;  %v1187_v26 = vpop.permute.xlu0 %1186  ;;  %v744_v50 = vmul.f32 %v733_v60, %v2537_v35  ;;  %v740_v42 = vmul.f32 %v2503_v46, %v2440_v17  ;;  %v2959_v11 = vpack.c.bf16 %v2248_v55, %v2262_v57  ;;  %v1094_v17 = vld [vmem:[%s2923_s6 + $0x10] sm:$0xff]  ;;  %v796_v55 = vmul.f32 %v2603_v31, %v2503_v46 }
  0xae   : > { %v1283_v3 = vmul.f32 %v1192_v29, %v1101_v14  ;;  %v1282_v2 = vmul.f32 %v1187_v26, %v1100_v53  ;;  %1333 = vmatpush1.bf16.msra.mxu0 %v1305_v43  ;;  %1655 = vmatpush1.bf16.msra.mxu1 %v1305_v43  ;;  %v2958_v53 = vpack.c.bf16 %v2246_v47, %v2250_v51  ;;  %v1114_v60 = vld [vmem:[%s2923_s6 + $0xb0] sm:$0xff] }
  0xaf   : > { %959 = vrot.lane.b32.xlu1 %v844_v15, %s1815_s16  ;;  %955 = vrot.lane.b32.xlu0 %v842_v49, %s1815_s16  ;;  %v795_v47 = vmul.f32 %v2461_v63, %v2505_v34  ;;  %v828_v29 = vpack.c.bf16 %v744_v50, %v743_v23  ;;  %v826_v26 = vpack.c.bf16 %v740_v42, %v739_v41  ;;  %v1093_v34 = vld [vmem:[%s2923_s6 + $0x8] sm:$0xff]  ;;  %v1092_v63 = vld [vmem:[%s2923_s6] sm:$0xff] }
  0xb0   : > { %v1304_v61 = vpack.c.bf16 %v1283_v3, %v1282_v2  ;;  %1334 = vmatprep.subr.bf16.mxu0 %v2956_v38  ;;  %1643 = vmatprep.subr.bf16.mxu1 %v2956_v38  ;;  %v799_v15 = vmul.f32 %v2456_v22, %v2539_v12  ;;  %v800_v49 = vmul.f32 %v2596_v18, %v2537_v35 }
  0xb1   : > { %v1182_v39 = vpop.permute.xlu1 %1181  ;;  %v1177_v8 = vpop.permute.xlu0 %1176  ;;  %v850_v18 = vpack.c.bf16 %v796_v55, %v795_v47  ;;  %v1109_v47 = vld [vmem:[%s2923_s6 + $0x88] sm:$0xff]  ;;  %v1108_v55 = vld [vmem:[%s2923_s6 + $0x80] sm:$0xff] }
  0xb2   : > { %v1281_v28 = vmul.f32 %v1182_v39, %v1099_v1  ;;  %v1280_v10 = vmul.f32 %v1177_v8, %v1098_v16  ;;  %1335 = vmatpush1.bf16.msra.mxu0 %v1304_v61  ;;  %1656 = vmatpush1.bf16.msra.mxu1 %v1304_v61  ;;  %v852_v12 = vpack.c.bf16 %v800_v49, %v799_v15  ;;  %v1117_v16 = vld [vmem:[%s2923_s6 + $0xc8] sm:$0xff] }
  0xb3   : > { %911 = vrot.lane.b32.xlu1 %v824_v0, %s1817_s21  ;;  %907 = vrot.lane.b32.xlu0 %v822_v54, %s1817_s21  ;;  %v1116_v0 = vld [vmem:[%s2923_s6 + $0xc0] sm:$0xff] }
  0xb4   : > { %v1303_v56 = vpack.c.bf16 %v1281_v28, %v1280_v10  ;;  %1336 = vmatprep.subr.bf16.mxu0 %v2956_v38  ;;  %1644 = vmatprep.subr.bf16.mxu1 %v2956_v38  ;;  %v2960_v10 = vpack.c.bf16 %v2232_v27, %v2279_v6  ;;  %v1113_v27 = vld [vmem:[%s2923_s6 + $0xa8] sm:$0xff]  ;;  %v1112_v6 = vld [vmem:[%s2923_s6 + $0xa0] sm:$0xff] }
  0xb5   : > { %v1172_v24 = vpop.permute.xlu1 %1171  ;;  %v1167_v19 = vpop.permute.xlu0 %1166 }
  0xb6   : > { %v1279_v25 = vmul.f32 %v1172_v24, %v1097_v40  ;;  %v1278_v14 = vmul.f32 %v1167_v19, %v1096_v32  ;;  %1337 = vmatpush1.bf16.msra.mxu0 %v1303_v56  ;;  %1657 = vmatpush1.bf16.msra.mxu1 %v1303_v56 }
  0xb7   : > { %971 = vrot.lane.b32.xlu1 %v2958_v53, %s1818_s20  ;;  %967 = vrot.lane.b32.xlu0 %v2959_v11, %s1818_s20  ;;  %s1821_s20 = smov [#allocation2]  }
  0xb8   : > { %v1302_v43 = vpack.c.bf16 %v1279_v25, %v1278_v14  ;;  %1338 = vmatprep.subr.bf16.mxu0 %v2956_v38  ;;  %1645 = vmatprep.subr.bf16.mxu1 %v2956_v38  ;;  %v1111_v25 = vld [vmem:[%s2923_s6 + $0x98] sm:$0xff]  ;;  %v1110_v14 = vld [vmem:[%s2923_s6 + $0x90] sm:$0xff]  ;;  %s1739_s16 = sshll.u32 %s1821_s20, 4  ;;  %s1740_s16 = int_to_ptr.vmem [resolvable:$false] %s1739_s16 }
  0xb9   : > { %v1162_v51 = vpop.permute.xlu1 %1161  ;;  %v1157_v57 = vpop.permute.xlu0 %1156  ;;  %s1741_s25 = scalar_lea.vmem %s1740_s16, 2048 }
  0xba   : > { %v1277_v3 = vmul.f32 %v1162_v51, %v1095_v5  ;;  %v1276_v2 = vmul.f32 %v1157_v57, %v1094_v17  ;;  %1339 = vmatpush1.bf16.msra.mxu0 %v1302_v43  ;;  %1658 = vmatpush1.bf16.msra.mxu1 %v1302_v43 }
  0xbb   : > { %923 = vrot.lane.b32.xlu1 %v828_v29, %s1820_s26  ;;  %919 = vrot.lane.b32.xlu0 %v826_v26, %s1820_s26 }
  0xbc   : > { %v1301_v22 = vpack.c.bf16 %v1277_v3, %v1276_v2  ;;  %1340 = vmatprep.subr.bf16.mxu0 %v2956_v38  ;;  %1646 = vmatprep.subr.bf16.mxu1 %v2956_v38 }
  0xbd   : > { %v1152_v46 = vpop.permute.xlu1 %1151  ;;  %v1147_v35 = vpop.permute.xlu0 %1146 }
  0xbe   : > { %v1275_v31 = vmul.f32 %v1152_v46, %v1093_v34  ;;  %v1274_v1 = vmul.f32 %v1147_v35, %v1092_v63  ;;  %1341 = vmatpush1.bf16.msra.mxu0 %v1301_v22  ;;  %1659 = vmatpush1.bf16.msra.mxu1 %v1301_v22 }
  0xbf   : > { %983 = vrot.lane.b32.xlu1 %v852_v12, %s1816_s19  ;;  %979 = vrot.lane.b32.xlu0 %v850_v18, %s1816_s19 }
  0xc0   : > { %v1300_v54 = vpack.c.bf16 %v1275_v31, %v1274_v1  ;;  %1342 = vmatprep.subr.bf16.mxu0 %v2956_v38  ;;  %1647 = vmatprep.subr.bf16.mxu1 %v2956_v38 }
  0xc1   : > { %v1272_v61 = vpop.permute.xlu1 %1271  ;;  %v1267_v39 = vpop.permute.xlu0 %1266 }
  0xc2   : > { %v1299_v8 = vmul.f32 %v1272_v61, %v1117_v16  ;;  %v1298_v28 = vmul.f32 %v1267_v39, %v1116_v0  ;;  %1343 = vmatpush1.bf16.msra.mxu0 %v1300_v54  ;;  %1660 = vmatpush1.bf16.msra.mxu1 %v1300_v54 }
  0xc3   : > { %935 = vrot.lane.b32.xlu1 %v2303_v37, %s1819_s22  ;;  %931 = vrot.lane.b32.xlu0 %v2960_v10, %s1819_s22  ;;  %s361_s22 = sand.u32 1, %s1795_s28  }
  0xc4   : > { %v1312_v40 = vpack.c.bf16 %v1299_v8, %v1298_v28  ;;  %1350 = vmatprep.subr.bf16.mxu0 %v2956_v38  ;;  %1648 = vmatprep.subr.bf16.mxu1 %v2956_v38  ;;  %s1542_s11 = sshll.u32 %s361_s22, 6  ;;  %s2872_s30 = scalar_lea.sflag [#allocation3], %s361_s22 }
  0xc5   : > { %v1262_v32 = vpop.permute.xlu1 %1261  ;;  %v1257_v37 = vpop.permute.xlu0 %1256  ;;  %s2843_s26 = scalar_lea.vmem [#allocation2], %s1542_s11 }
  0xc6   : > { %v1297_v56 = vmul.f32 %v1262_v32, %v1115_v33  ;;  %v1296_v24 = vmul.f32 %v1257_v37, %v1114_v60  ;;  %1351 = vmatpush2.bf16.msra.mxu0 %v1312_v40  ;;  %1661 = vmatpush2.bf16.msra.mxu1 %v1312_v40  ;;  %v2961_v37 = vpack.c.bf16 %v2491_v44, %v2477_v48  ;;  %s1425_s21 = sshll.u32 %s2843_s26, 4  ;;  %s2864_s21 = int_to_ptr.vmem [resolvable:$true] %s1425_s21 }
  0xc7   : > { %1352 = vmatprep.subr.bf16.mxu0 %v2956_v38  ;;  %1649 = vmatprep.subr.bf16.mxu1 %v2956_v38  ;;  %s1735_s24 = scalar_lea.vmem %s2864_s21, 1024  ;;  %p1742_p1 = scmp.lt.s32.totalorder %s2864_s21, %s1740_s16 }
  0xc8   : > { %v1311_v19 = vpack.c.bf16 %v1297_v56, %v1296_v24  ;;  %p1736_p12 = scmp.ne.s32.totalorder %s2864_s21, %s1735_s24  ;;  %p1743_p2 = scmp.lt.s32.totalorder %s1741_s25, %s1735_s24 }
  0xc9   : > { %v1252_v23 = vpop.permute.xlu1 %1251  ;;  %v1247_v50 = vpop.permute.xlu0 %1246 }
  0xca   : > { %v1295_v41 = vmul.f32 %v1252_v23, %v1113_v27  ;;  %v1294_v42 = vmul.f32 %v1247_v50, %v1112_v6  ;;  %1353 = vmatpush2.bf16.msra.mxu0 %v1311_v19  ;;  %1662 = vmatpush2.bf16.msra.mxu1 %v1311_v19  ;;  %p1737_p13 = pnand %p1736_p12, %p1909_p4  ;;  %p1744_p3 = por %p1743_p2, %p1742_p1 }
  0xcb   : > { %1354 = vmatprep.subr.bf16.mxu0 %v2956_v38  ;;  %1650 = vmatprep.subr.bf16.mxu1 %v2956_v38 }
  0xcc   : > { %v1310_v53 = vpack.c.bf16 %v1295_v41, %v1294_v42  ;;  %p1738_p0 = pneg %p1737_p13 }
  0xcd   : > { %v1242_v11 = vpop.permute.xlu1 %1241  ;;  %v1237_v5 = vpop.permute.xlu0 %1236 }
  0xce   : > { %v1293_v17 = vmul.f32 %v1242_v11, %v1111_v25  ;;  %v1292_v43 = vmul.f32 %v1237_v5, %v1110_v14  ;;  %1355 = vmatpush2.bf16.msra.mxu0 %v1310_v53  ;;  %1663 = vmatpush2.bf16.msra.mxu1 %v1310_v53  ;;  %v2963_v25 = vld [vmem:[#allocation6_spill] sm:$0xff]  ;;  %p1745_p5 = pnand %p1744_p3, %p1738_p0 }
  0xcf   : > { %1356 = vmatprep.subr.bf16.mxu0 %v2956_v38  ;;  %1651 = vmatprep.subr.bf16.mxu1 %v2956_v38  ;;  %v2964_v14 = vpack.c.bf16 %v2310_v58, %v2963_v25 }
  0xd0   : > { %v1309_v51 = vpack.c.bf16 %v1293_v17, %v1292_v43 }
  0xd1   : > { %v1232_v57 = vpop.permute.xlu1 %1231  ;;  %v1227_v29 = vpop.permute.xlu0 %1226 }
  0xd2   : > { %v1291_v26 = vmul.f32 %v1232_v57, %v1109_v47  ;;  %v1290_v15 = vmul.f32 %v1227_v29, %v1108_v55  ;;  %1357 = vmatpush2.bf16.msra.mxu0 %v1309_v51  ;;  %1664 = vmatpush2.bf16.msra.mxu1 %v1309_v51 }
  0xd3   : > { %1358 = vmatprep.subr.bf16.mxu0 %v2956_v38  ;;  %1652 = vmatprep.subr.bf16.mxu1 %v2956_v38 }
  0xd4   : > { %v1308_v49 = vpack.c.bf16 %v1291_v26, %v1290_v15 }
  0xd5   : > { %v862_v3 = vpop.permute.xlu1 %861  ;;  %v858_v2 = vpop.permute.xlu0 %857 }
  0xd6   : > { %1359 = vmatpush2.bf16.msra.mxu0 %v1308_v49  ;;  %1665 = vmatpush2.bf16.msra.mxu1 %v1308_v49  ;;  %v994_v56 = vsel %vm985_vm1, %v2961_v37, %v862_v3  ;;  %v988_v24 = vsel %vm985_vm1, %v801_v45, %v858_v2  ;;  %v2967_v37 = vld [vmem:[#allocation7_spill] sm:$0xff] }
  0xd9   : > { %v874_v34 = vpop.permute.xlu1 %873  ;;  %v870_v63 = vpop.permute.xlu0 %869 }
  0xda   : > { %v1004_v27 = vsel %vm998_vm2, %v994_v56, %v874_v34  ;;  %v1000_v6 = vsel %vm998_vm2, %v988_v24, %v870_v63  ;;  %v2968_v56 = vpack.c.bf16 %v2384_v7, %v2967_v37 }
  0xdd   : > { %v946_v22 = vpop.permute.xlu1 %945  ;;  %v942_v46 = vpop.permute.xlu0 %941 }
  0xde   : > { %v1064_v45 = vsel %vm985_vm1, %v2962_v21, %v946_v22  ;;  %v1058_v53 = vsel %vm985_vm1, %v2964_v14, %v942_v46 }
  0xe1   : > { %v898_v35 = vpop.permute.xlu1 %897  ;;  %v894_v12 = vpop.permute.xlu0 %893 }
  0xe5   : > { %v910_v18 = vpop.permute.xlu1 %909  ;;  %v906_v31 = vpop.permute.xlu0 %905 }
  0xe9   : > { %v970_v1 = vpop.permute.xlu1 %969  ;;  %v966_v16 = vpop.permute.xlu0 %965 }
  0xed   : > { %v934_v0 = vpop.permute.xlu1 %933  ;;  %v930_v54 = vpop.permute.xlu0 %929 }
  0xf1   : > { %v864_v61 = vpop.permute.xlu1 %863  ;;  %v860_v39 = vpop.permute.xlu0 %859 }
  0xf5   : > { %v876_v38 = vpop.permute.xlu1 %875  ;;  %v872_v8 = vpop.permute.xlu0 %871 }
  0xf9   : > { %v948_v28 = vpop.permute.xlu1 %947  ;;  %v944_v10 = vpop.permute.xlu0 %943 }
  0xfa   : > { %v1067_v24 = vsel %vm985_vm1, %v2968_v56, %v948_v28 }
  0xfd   : > { %v2760_v33 = vpop.permute.xlu1 %899  ;;  %v2762_v60 = vpop.permute.xlu0 %895 }
 0x10c   : > { %v886_v40 = vpop.permute.xlu1 %885  ;;  %v882_v32 = vpop.permute.xlu0 %881 }
 0x10d   : > { %v1013_v50 = vsel %vm1007_vm3, %v1004_v27, %v886_v40  ;;  %v1009_v41 = vsel %vm1007_vm3, %v1000_v6, %v882_v32 }
 0x10e   : > { %v1022_v44 = vsel %vm1016_vm4, %v1013_v50, %v898_v35  ;;  %v1018_v48 = vsel %vm1016_vm4, %v1009_v41, %v894_v12  ;;  %v2965_v12 = vld [vmem:[#allocation8_spill] sm:$0xff] }
 0x10f   : > { %v1031_v17 = vsel %vm1025_vm5, %v1022_v44, %v910_v18  ;;  %v1027_v43 = vsel %vm1025_vm5, %v1018_v48, %v906_v31  ;;  %v2966_v18 = vld [vmem:[#allocation5_spill] sm:$0xff] }
 0x110   : > { %v958_v19 = vpop.permute.xlu1 %957  ;;  %v954_v23 = vpop.permute.xlu0 %953  ;;  %v834_v31 = vpack.c.bf16 %v2966_v18, %v2965_v12 }
 0x111   : > { %v1073_v11 = vsel %vm998_vm2, %v1064_v45, %v958_v19  ;;  %v1069_v5 = vsel %vm998_vm2, %v1058_v53, %v954_v23 }
 0x112   : > { %v1077_v58 = vsel %vm1007_vm3, %v1069_v5, %v966_v16  ;;  %v1081_v51 = vsel %vm1007_vm3, %v1073_v11, %v970_v1  ;;  %v1061_v27 = vsel %vm985_vm1, %v834_v31, %v944_v10 }
 0x114   : > { %v922_v42 = vpop.permute.xlu1 %921  ;;  %v918_v13 = vpop.permute.xlu0 %917 }
 0x115   : > { %v1040_v47 = vsel %vm1034_vm6, %v1031_v17, %v922_v42  ;;  %v1036_v59 = vsel %vm1034_vm6, %v1027_v43, %v918_v13 }
 0x116   : > { %v1045_v26 = vsel %vm1043_vm7, %v1036_v59, %v930_v54  ;;  %v1051_v15 = vsel %vm1043_vm7, %v1040_v47, %v934_v0  ;;  %v997_v0 = vsel %vm985_vm1, %v804_v4, %v864_v61  ;;  %v991_v54 = vsel %vm985_vm1, %v802_v20, %v860_v39 }
 0x117   : > { %v1006_v40 = vsel %vm998_vm2, %v997_v0, %v876_v38  ;;  %v1002_v32 = vsel %vm998_vm2, %v991_v54, %v872_v8 }
 0x119   : > { %v982_v36 = vpop.permute.xlu1 %981  ;;  %v978_v55 = vpop.permute.xlu0 %977 }
 0x11a   : > { %v1085_v57 = vsel %vm1016_vm4, %v1077_v58, %v978_v55  ;;  %v1089_v29 = vsel %vm1016_vm4, %v1081_v51, %v982_v36 }
 0x11b   : > { %1550 = vmatprep.mubr.msk.bf16.mxu0 %vm1025_vm5, %v1085_v57  ;;  %1552 = vmatprep.mubr.msk.bf16.mxu1 %vm1025_vm5, %v1089_v29 }
 0x11c   : > { %1361 = vmatmul.mubr.bf16.vlgmr.msra.gmra.mxu0 %v1045_v26  ;;  %1377 = vmatmul.mubr.bf16.vlgmr.msra.gmra.mxu1 %v1051_v15 }
 0x11d   : > { %v888_v49 = vpop.permute.xlu1 %887  ;;  %v884_v3 = vpop.permute.xlu0 %883 }
 0x11e   : > { %v1015_v52 = vsel %vm1007_vm3, %v1006_v40, %v888_v49  ;;  %v1011_v30 = vsel %vm1007_vm3, %v1002_v32, %v884_v3 }
 0x11f   : > { %v1024_v8 = vsel %vm1016_vm4, %v1015_v52, %v2760_v33  ;;  %v1020_v28 = vsel %vm1016_vm4, %v1011_v30, %v2762_v60  ;;  %v1549_v60 = vld [vmem:[%s2924_s7] ss:$0 sm:$0xff] }
 0x121   : > { %v960_v2 = vpop.permute.xlu1 %959  ;;  %v956_v34 = vpop.permute.xlu0 %955 }
 0x122   : > { %v1075_v4 = vsel %vm998_vm2, %v1067_v24, %v960_v2  ;;  %v1071_v9 = vsel %vm998_vm2, %v1061_v27, %v956_v34 }
 0x125   : > { %v912_v63 = vpop.permute.xlu1 %911  ;;  %v908_v22 = vpop.permute.xlu0 %907 }
 0x126   : > { %v1033_v10 = vsel %vm1025_vm5, %v1024_v8, %v912_v63  ;;  %v1029_v6 = vsel %vm1025_vm5, %v1020_v28, %v908_v22 }
 0x129   : > { %v972_v46 = vpop.permute.xlu1 %971  ;;  %v968_v35 = vpop.permute.xlu0 %967 }
 0x12a   : > { %v1083_v62 = vsel %vm1007_vm3, %v1075_v4, %v972_v46  ;;  %v1079_v20 = vsel %vm1007_vm3, %v1071_v9, %v968_v35 }
 0x12d   : > { %v924_v1 = vpop.permute.xlu1 %923  ;;  %v920_v16 = vpop.permute.xlu0 %919 }
 0x12e   : > { %v1042_v19 = vsel %vm1034_vm6, %v1033_v10, %v924_v1  ;;  %v1038_v23 = vsel %vm1034_vm6, %v1029_v6, %v920_v16 }
 0x131   : > { %v984_v61 = vpop.permute.xlu1 %983  ;;  %v980_v39 = vpop.permute.xlu0 %979 }
 0x132   : > { %v1091_v7 = vsel %vm1016_vm4, %v1083_v62, %v984_v61  ;;  %v1087_v38 = vsel %vm1016_vm4, %v1079_v20, %v980_v39 }
 0x133   : > { %1551 = vmatprep.mubr.msk.bf16.mxu0 %vm1025_vm5, %v1087_v38  ;;  %1553 = vmatprep.mubr.msk.bf16.mxu1 %vm1025_vm5, %v1091_v7 }
 0x135   : > { %v936_v50 = vpop.permute.xlu1 %935  ;;  %v932_v41 = vpop.permute.xlu0 %931 }
 0x136   : > { %v1048_v33 = vsel %vm1043_vm7, %v1038_v23, %v932_v41  ;;  %v1054_v44 = vsel %vm1043_vm7, %v1042_v19, %v936_v50 }
 0x137   : > { %1369 = vmatmul.mubr.bf16.gmra.mxu0 %v1048_v33  ;;  %1385 = vmatmul.mubr.bf16.gmra.mxu1 %v1054_v44 }
 0x1dc   : > { %v1362_v48 = vpop.f32.mrf.mxu0  ;;  %v1378_v42 = vpop.f32.mrf.mxu1 }
 0x1dd   : > { %v1363_v13 = vadd.f32 %v1549_v60, %v1362_v48  ;;  %v1379_v21 = vadd.f32 %v1549_v60, %v1378_v42 }
 0x1de   : > { %v1364_v45 = vpop.f32.mrf.mxu0  ;;  %v1380_v25 = vpop.f32.mrf.mxu1 }
 0x1df   : > { %v1393_v14 = vmax.f32 %v1363_v13, 0.0  ;;  %v1397_v53 = vmax.f32 %v1379_v21, 0.0 }
 0x1e0   : > { %v1365_v11 = vpop.f32.mrf.mxu0  ;;  %v1381_v5 = vpop.f32.mrf.mxu1 }
 0x1e1   : > { %1401 = vst.msk [vmem:[%s2843_s26] sm:$0xff] %vm985_vm1, %v1393_v14  ;;  %1405 = vst.msk [vmem:[%s2843_s26 + $0x20] sm:$0xff] %vm985_vm1, %v1397_v53  ;;  %v1366_v17 = vadd.f32 %v1549_v60, %v1365_v11  ;;  %v1382_v43 = vadd.f32 %v1549_v60, %v1381_v5 }
 0x1e2   : > { %v1367_v47 = vpop.f32.mrf.mxu0  ;;  %v1383_v59 = vpop.f32.mrf.mxu1 }
 0x1e3   : > { %v1394_v36 = vmax.f32 %v1366_v17, 0.0  ;;  %v1398_v55 = vmax.f32 %v1382_v43, 0.0 }
 0x1e5   : > { %1402 = vst.msk [vmem:[%s2843_s26 + $0x8] sm:$0xff] %vm985_vm1, %v1394_v36  ;;  %1406 = vst.msk [vmem:[%s2843_s26 + $0x28] sm:$0xff] %vm985_vm1, %v1398_v55 }
 0x1f7   : > { %v1370_v58 = vpop.f32.mrf.mxu0  ;;  %v1386_v51 = vpop.f32.mrf.mxu1 }
 0x1f8   : > { %v1371_v57 = vadd.f32 %v1549_v60, %v1370_v58  ;;  %v1387_v29 = vadd.f32 %v1549_v60, %v1386_v51 }
 0x1f9   : > { %v1372_v26 = vpop.f32.mrf.mxu0  ;;  %v1388_v15 = vpop.f32.mrf.mxu1 }
 0x1fa   : > { %v1395_v49 = vmax.f32 %v1371_v57, 0.0  ;;  %v1399_v3 = vmax.f32 %v1387_v29, 0.0 }
 0x1fb   : > { %v1373_v2 = vpop.f32.mrf.mxu0  ;;  %v1389_v34 = vpop.f32.mrf.mxu1 }
 0x1fc   : > { %1403 = vst.msk [vmem:[%s2843_s26 + $0x10] sm:$0xff] %vm985_vm1, %v1395_v49  ;;  %1407 = vst.msk [vmem:[%s2843_s26 + $0x30] sm:$0xff] %vm985_vm1, %v1399_v3  ;;  %v1374_v63 = vadd.f32 %v1549_v60, %v1373_v2  ;;  %v1390_v22 = vadd.f32 %v1549_v60, %v1389_v34 }
 0x1fd   : > { %v1375_v46 = vpop.f32.mrf.mxu0  ;;  %v1391_v35 = vpop.f32.mrf.mxu1 }
 0x1fe   : > { %v1396_v12 = vmax.f32 %v1374_v63, 0.0  ;;  %v1400_v18 = vmax.f32 %v1390_v22, 0.0 }
 0x200   : > { %1404 = vst.msk [vmem:[%s2843_s26 + $0x18] sm:$0xff] %vm985_vm1, %v1396_v12  ;;  %1408 = vst.msk [vmem:[%s2843_s26 + $0x38] sm:$0xff] %vm985_vm1, %v1400_v18 }
 0x201   : > { %1748 = shalt.err (!%p1745_p5)
}
 0x202   : > { %s1749_s22 = scalar_lea.hbm %s2862_s23, 1024  ;;  %s1753_s14 = scalar_lea.hbm %s2925_s8, 2048 }
 0x203   : > { %p1750_p6 = scmp.ne.s32.totalorder %s2862_s23, %s1749_s22  ;;  %p1754_p10 = scmp.lt.s32.totalorder %s2862_s23, %s2925_s8 }
 0x204   : > { %p1755_p11 = scmp.lt.s32.totalorder %s1753_s14, %s1749_s22 }
 0x205   : > { %p1751_p7 = pnand %p1750_p6, %p1909_p4 }
 0x206   : > { %p1756_p12 = por %p1755_p11, %p1754_p10 }
 0x207   : > { %p1752_p9 = pneg %p1751_p7 }
 0x209   : > { %p1757_p13 = pnand %p1756_p12, %p1752_p9 }
 0x20b   : > { %1760 = shalt.err (!%p1757_p13)
}
 0x20c   : > { %s1822_s24 = smov 128   ;;  %s1823_s20 = smov 8  }
 0x20d   : > { %1668 = dma.vmem_to_hbm [thread:$0]  (%p1909_p4), %s2864_s21, 1024, %s2862_s23, %s2872_s30, %s1822_s24, %s1822_s24, %s1823_s20  }
 0x20e PF: > { %p1674_p0 = scmp.ge.s32.totalorder %s1811_s10, 2  ;;  %s1440_s16 = sand.u32 1, %s1791_s27  }
 0x20f   : > { %s1441_s25 = scalar_lea.sflag [#allocation3], %s1440_s16 }
 0x210   : > { %p1671_p1 = pnand %p1674_p0, %p1916_p8 }
 0x212   : > { %p1672_p2 = pneg %p1671_p1 }
 0x214   : > { %1786 = dma.done.wait (%p1672_p2), %s1441_s25, 1024  }
 0x215   : > { %1788 = vsyncadd (%p1672_p2), %s1441_s25, 4294966272  ;;  %s21_s10 = sadd.s32 1, %s1811_s10   ;;  %s2969_s27 = smov %s1795_s28 }
 0x216   : > { %p18_p3 = scmp.ge.s32.totalorder %s21_s10, 4   ;;  %s2970_s28 = smov %s1799_s29 }
 0x217   : > { %s2971_s29 = smov %s1922_s18  ;;  %s2972_s30 = smov %s1807_s9 }
 0x218   : > { %s2973_s9 = smov %s2975_s13  ;;  %20 = sbr.rel (!%p18_p3) target bundleno = 4 (0x4), region = 93 }
 0x21d   :  { %1446 = vsyncpa [#allocation3], 1 }
 0x21e   :  { %1448 = vsyncpa [#allocation3 + $0x1], 1 }

</bundles_post_ra>
